<compile_context>
chip_gen: v7x
topology: tpu7x:2x2x1
jax: 0.10.0
libtpu: 0.0.40
codegen_flags: <defaults>
</compile_context>

<pallas_src>
import functools

import jax
import jax.numpy as jnp
from jax.experimental import pallas as pl
from jax.experimental.pallas import tpu as pltpu

LANE = 128  # lane-dense width for the decoder output slab


# -----------------------------------------------------------------------------
# Fused forward kernel (single pallas_call, everything VMEM-resident)
# -----------------------------------------------------------------------------
def _fused_amg_kernel(
    # graph / feature operands
    n_in, e_in, gsrc, gdst, smean,
    # encoders: (6,H,H) weights / (6,1,H) biases -> [node 0..2 | edge 3..5]
    enc_w, enc_b,
    # SAGEConv: (2,H,H) -> [w_self, w_neigh], (1,H) bias
    sage_w, sage_b,
    # NNConv edge-function MLP (final layer column-permuted to o-major) + bias
    ef_w1, ef_b1, ef_w2, ef_b2, ef_w3, ef_b3, nn_b,
    # GNblock, stacked by shape:
    #   gnw_a (2,H,16)  = [ge_w1 @e_encs, gn_w1 @h_N]
    #   gnw_b (3,Oc,16) = [ge_w1 @hn_src, ge_w1 @hn_dst, gn_w1 @h_n]
    #   gnw_2 (2,16,16) = [ge_w2, gn_w2];  gnw_3 (2,16,H) = [ge_w3, gn_w3]
    #   gnb_1 (4,1,16)  = [ge_b1, ge_b2, gn_b1, gn_b2];  gnb_3 (2,1,H) = [ge_b3, gn_b3]
    gnw_a, gnw_b, gnw_2, gnw_3, gnb_1, gnb_3,
    # decoder: dec_w1 (3,H,H/2) = [@h_e, @h_src, @h_dst]; head padded to 128 lanes
    dec_w1, dec_b1, dec_w2, dec_b2, dec_w3, dec_b3,
    # output
    out_ref,
    *, H, Oc,
):
    f32 = jnp.float32

    def mm(a, b):
        return jnp.dot(a, b, preferred_element_type=f32)

    def relu(x):
        return jnp.maximum(x, 0.0)

    def sigmoid(x):
        # exact logistic (EUP exp + VPU divide) -> torch.sigmoid parity, in [0,1]
        return 1.0 / (1.0 + jnp.exp(-x))

    # one-hot gathers ride the MXU in bf16 (one-hot exact, activations rounded,
    # f32 accumulate); the mean scatter stays f32 for exact normalization.
    G_src = gsrc[...]                                   # (E, N) bf16
    G_dst = gdst[...]                                   # (E, N) bf16
    S_mean = smean[...]                                 # (N, E) f32

    def gather(g, x):
        return mm(g, x.astype(jnp.bfloat16))

    # ---- encoders: Linear-ReLU, Linear-ReLU, Linear-Sigmoid ------------------
    def encoder(x, base):
        h = relu(mm(x, enc_w[base]) + enc_b[base])
        h = relu(mm(h, enc_w[base + 1]) + enc_b[base + 1])
        return sigmoid(mm(h, enc_w[base + 2]) + enc_b[base + 2])

    n_encs = encoder(n_in[...], 0)                      # (N, H)
    e_encs = encoder(e_in[...], 3)                      # (E, H)

    # hoisted gather: n_encs[src] is needed by BOTH conv1 and conv2 -> one matmul
    n_src = gather(G_src, n_encs)                       # (E, H)

    # ---- conv1: SAGEConv(mean, edge_weight=e_encs), activation=relu ----------
    h_neigh = mm(S_mean, n_src * e_encs)                # (N, H)
    h1 = relu(mm(n_encs, sage_w[0]) + mm(h_neigh, sage_w[1]) + sage_b[...])

    # ---- conv2: NNConv(mean), edge_func = mlp_e_func --------------------------
    we = relu(mm(e_encs, ef_w1[...]) + ef_b1[...])
    we = relu(mm(we, ef_w2[...]) + ef_b2[...])
    # final layer columns are permuted (wrapper) to o-major layout: col = o*2H + k
    w_edge = sigmoid(mm(we, ef_w3[...]) + ef_b3[...])   # (E, Oc*2H)
    h1_src = gather(G_src, h1)                          # (E, H)
    # per-edge matvec  msgs2[e, o] = sum_k h_cat[src[e], k] * W_e[e, k, o]
    # done with static lane slices + VPU multiplies + XLU lane reductions
    # (no expand / summat data-replication matmuls).
    col = jax.lax.broadcasted_iota(jnp.int32, (1, Oc), 1)
    msgs2 = jnp.zeros((h1_src.shape[0], Oc), f32)
    for o in range(Oc):                                 # Oc is tiny & static -> unrolled
        w_a = w_edge[:, o * 2 * H: o * 2 * H + H]       # weights hitting h1[src]
        w_b = w_edge[:, o * 2 * H + H: (o + 1) * 2 * H]  # weights hitting n_encs[src]
        m_o = jnp.sum(h1_src * w_a + n_src * w_b, axis=1, keepdims=True)   # (E, 1)
        msgs2 = msgs2 + m_o * (col == o).astype(f32)
    h_n = mm(S_mean, msgs2) + nn_b[...]                 # (N, Oc)

    # ---- conv3: GNblock --------------------------------------------------------
    hn_src = gather(G_src, h_n)                         # (E, Oc)
    hn_dst = gather(G_dst, h_n)                         # (E, Oc)
    ge = relu(mm(e_encs, gnw_a[0]) + mm(hn_src, gnw_b[0])
              + mm(hn_dst, gnw_b[1]) + gnb_1[0])
    ge = relu(mm(ge, gnw_2[0]) + gnb_1[1])
    h_e = sigmoid(mm(ge, gnw_3[0]) + gnb_3[0])          # (E, H) new edge feats
    h_N = mm(S_mean, h_e)                               # (N, H) mean aggregate
    gn = relu(mm(h_n, gnw_b[2]) + mm(h_N, gnw_a[1]) + gnb_1[2])
    gn = relu(mm(gn, gnw_2[1]) + gnb_1[3])
    h_n2 = sigmoid(mm(gn, gnw_3[1]) + gnb_3[1])         # (N, H) new node feats

    # ---- decoder: lane-dense 128-wide store (column 0 is the real P) ----------
    hs2 = gather(G_src, h_n2)                           # (E, H)
    hd2 = gather(G_dst, h_n2)                           # (E, H)
    d = relu(mm(h_e, dec_w1[0]) + mm(hs2, dec_w1[1])
             + mm(hd2, dec_w1[2]) + dec_b1[...])
    d = relu(mm(d, dec_w2[...]) + dec_b2[...])
    out_ref[...] = sigmoid(mm(d, dec_w3[...]) + dec_b3[...])      # (E, 128)


# -----------------------------------------------------------------------------
# Parameter construction (deterministic, arrays only -> jit-safe pytree)
# -----------------------------------------------------------------------------
def init_linear(key, fan_in, fan_out):
    kw, kb = jax.random.split(key)
    w = jax.random.normal(kw, (fan_in, fan_out), jnp.float32) / jnp.sqrt(float(fan_in))
    b = 0.01 * jax.random.normal(kb, (fan_out,), jnp.float32)
    return w, b


def init_mlp(key, in_size, latent, out_size):
    """make_mlp(num_layers=1): Lin-ReLU, Lin-ReLU, Lin-Sigmoid (3 linear layers)."""
    sizes = [(in_size, latent), (latent, latent), (latent, out_size)]
    keys = jax.random.split(key, len(sizes))
    return [init_linear(k, fi, fo) for k, (fi, fo) in zip(keys, sizes)]


def make_params(key, h_feats, out_conv_feats):
    ks = jax.random.split(key, 8)
    return {
        "enc_n": init_mlp(ks[0], 2, h_feats, h_feats),
        "enc_e": init_mlp(ks[1], 3, h_feats, h_feats),
        # SAGEConv(mean): fc_self / fc_neigh (no per-fc bias) + additive bias
        "sage_w_self": init_linear(ks[2], h_feats, h_feats)[0],
        "sage_w_neigh": init_linear(ks[3], h_feats, h_feats)[0],
        "sage_b": jnp.zeros((h_feats,), jnp.float32),
        # NNConv edge function + bias
        "e_func": init_mlp(ks[4], h_feats, 2 * h_feats, 2 * out_conv_feats * h_feats),
        "nnconv_b": jnp.zeros((out_conv_feats,), jnp.float32),
        # GNblock (latent 16)
        "gn_e": init_mlp(ks[5], h_feats + 2 * out_conv_feats, 16, h_feats),
        "gn_n": init_mlp(ks[6], out_conv_feats + h_feats, 16, h_feats),
        # decoder
        "dec": init_mlp(ks[7], 3 * h_feats, h_feats // 2, 1),
    }


# -----------------------------------------------------------------------------
# Forward pass wrapper: builds dense graph operators, packs weights, calls the
# single fused Pallas kernel.
# -----------------------------------------------------------------------------
def amg_forward(params, src, dst, C, F, A, SP1, SP0, *, h_feats, out_conv_feats):
    f32 = jnp.float32
    bf16 = jnp.bfloat16
    N = C.shape[0]
    E = src.shape[0]
    H = h_feats
    Oc = out_conv_feats

    # raw feature concat; pad contracting dim to H so the encoder first-layer
    # weights live in the same (H,H) stacks as the rest of the encoders
    n_in = jnp.pad(jnp.concatenate([C, F], axis=1).astype(f32), ((0, 0), (0, H - 2)))
    e_in = jnp.pad(jnp.concatenate([A, SP1, SP0], axis=1).astype(f32), ((0, 0), (0, H - 3)))

    # dense graph operators (bf16 one-hot gathers are exact; mean scatter in f32)
    node_ids = jnp.arange(N, dtype=jnp.int32)
    oh_src = (src[:, None] == node_ids[None, :]).astype(f32)         # (E, N)
    oh_dst = (dst[:, None] == node_ids[None, :]).astype(f32)         # (E, N)
    gsrc = oh_src.astype(bf16)
    gdst = oh_dst.astype(bf16)
    indeg = oh_dst.sum(axis=0)                                       # (N,)
    smean = oh_dst.T / jnp.maximum(indeg, 1.0)[:, None]              # (N, E)

    def b2(b):
        return b.reshape(1, -1).astype(f32)

    en1, en2, en3 = params["enc_n"]
    ee1, ee2, ee3 = params["enc_e"]
    ef1, ef2, ef3 = params["e_func"]
    ge1, ge2, ge3 = params["gn_e"]
    gn1, gn2, gn3 = params["gn_n"]
    de1, de2, de3 = params["dec"]

    # encoders packed: 6x(H,H) weights (tiny first layers zero-padded) + 6 biases
    enc_w = jnp.stack([jnp.pad(en1[0], ((0, H - 2), (0, 0))), en2[0], en3[0],
                       jnp.pad(ee1[0], ((0, H - 3), (0, 0))), ee2[0], ee3[0]])
    enc_b = jnp.stack([b2(en1[1]), b2(en2[1]), b2(en3[1]),
                       b2(ee1[1]), b2(ee2[1]), b2(ee3[1])])

    sage_w = jnp.stack([params["sage_w_self"], params["sage_w_neigh"]])
    sage_b = b2(params["sage_b"])

    # NNConv edge-function: permute final-layer columns from torch's k-major
    # layout (col = k*Oc + o, i.e. .view(E, 2H, Oc)) to o-major (col = o*2H + k)
    # so the kernel slices contiguous per-output blocks (no expand/summat matmuls)
    ef_w3 = jnp.transpose(ef3[0].reshape(-1, 2 * H, Oc), (0, 2, 1)).reshape(-1, Oc * 2 * H)
    ef_b3 = jnp.transpose(ef3[1].reshape(2 * H, Oc)).reshape(1, Oc * 2 * H)
    nn_b = b2(params["nnconv_b"])

    # GNblock: first-layer weights pre-split per concat block, stacked by shape
    gnw_a = jnp.stack([ge1[0][:H], gn1[0][Oc:]])                       # (2, H, 16)
    gnw_b = jnp.stack([ge1[0][H:H + Oc], ge1[0][H + Oc:], gn1[0][:Oc]])  # (3, Oc, 16)
    gnw_2 = jnp.stack([ge2[0], gn2[0]])                                # (2, 16, 16)
    gnw_3 = jnp.stack([ge3[0], gn3[0]])                                # (2, 16, H)
    gnb_1 = jnp.stack([b2(ge1[1]), b2(ge2[1]), b2(gn1[1]), b2(gn2[1])])  # (4, 1, 16)
    gnb_3 = jnp.stack([b2(ge3[1]), b2(gn3[1])])                        # (2, 1, H)

    # decoder: first layer pre-split; 1-wide head padded to 128 lanes for an
    # unmasked lane-dense store (column 0 is the real output)
    dec_w1 = jnp.stack([de1[0][:H], de1[0][H:2 * H], de1[0][2 * H:]])  # (3, H, H//2)
    dec_b1 = b2(de1[1])
    dec_w2, dec_b2 = de2[0], b2(de2[1])
    dec_w3 = jnp.zeros((de3[0].shape[0], LANE), f32).at[:, :1].set(de3[0])
    dec_b3 = jnp.zeros((1, LANE), f32).at[:, 0].set(de3[1])

    args = (
        n_in, e_in, gsrc, gdst, smean,
        enc_w, enc_b, sage_w, sage_b,
        ef1[0], b2(ef1[1]), ef2[0], b2(ef2[1]), ef_w3, ef_b3, nn_b,
        gnw_a, gnw_b, gnw_2, gnw_3, gnb_1, gnb_3,
        dec_w1, dec_b1, dec_w2, dec_b2, dec_w3, dec_b3,
    )

    # single fused kernel: no grid -> every operand lives whole in VMEM for the
    # entire forward pass.  Size the scoped-VMEM limit from the real operand set.
    total_bytes = sum(a.size * a.dtype.itemsize for a in args) + E * LANE * 4
    vmem_limit = int(min(64 * 2 ** 20, max(32 * 2 ** 20, 2 * total_bytes)))

    kernel = functools.partial(_fused_amg_kernel, H=H, Oc=Oc)
    slab = pl.pallas_call(
        kernel,
        out_shape=jax.ShapeDtypeStruct((E, LANE), f32),
        in_specs=[pl.BlockSpec(memory_space=pltpu.MemorySpace.VMEM)] * len(args),
        out_specs=pl.BlockSpec(memory_space=pltpu.MemorySpace.VMEM),
        compiler_params=pltpu.CompilerParams(vmem_limit_bytes=vmem_limit),
    )(*args)
    return slab[:, 0]                                                  # (E,)


# -----------------------------------------------------------------------------
# Main
# -----------------------------------------------------------------------------
if __name__ == "__main__":
    H_FEATS = 32          # model_config.latent_size
    OUT_CONV = 4
    NUM_NODES = 16
    NUM_EDGES = 48

    root = jax.random.PRNGKey(0)
    k_par, k_src, k_dst, k_c, k_f, k_a, k_s1, k_s0 = jax.random.split(root, 8)

    params = make_params(k_par, H_FEATS, OUT_CONV)

    # deterministic small graph; every node has in-degree >= 1
    src = jax.random.randint(k_src, (NUM_EDGES,), 0, NUM_NODES, dtype=jnp.int32)
    dst = jnp.concatenate(
        [jnp.arange(NUM_NODES, dtype=jnp.int32),
         jax.random.randint(k_dst, (NUM_EDGES - NUM_NODES,), 0, NUM_NODES, dtype=jnp.int32)])

    C = jax.random.normal(k_c, (NUM_NODES, 1), jnp.float32)
    F = jax.random.normal(k_f, (NUM_NODES, 1), jnp.float32)
    A = jax.random.normal(k_a, (NUM_EDGES, 1), jnp.float32)
    SP1 = jax.random.normal(k_s1, (NUM_EDGES, 1), jnp.float32)
    SP0 = jax.random.normal(k_s0, (NUM_EDGES, 1), jnp.float32)

    fwd = jax.jit(functools.partial(amg_forward, h_feats=H_FEATS, out_conv_feats=OUT_CONV))
    P = jax.block_until_ready(fwd(params, src, dst, C, F, A, SP1, SP0))

    assert P.shape == (NUM_EDGES,), P.shape
    assert bool(jnp.all(jnp.isfinite(P)))
    # exact sigmoid output -> within [0, 1]
    assert bool(jnp.all((P >= 0.0) & (P <= 1.0)))
    print("KERNEL_OK")
</pallas_src>

<mosaic_0001>
module attributes {stable_mosaic.version = 11 : i64} {
  func.func @_fused_amg_kernel(%arg0: memref<16x32xf32, #tpu.memory_space<vmem>>, %arg1: memref<48x32xf32, #tpu.memory_space<vmem>>, %arg2: memref<48x16xbf16, #tpu.memory_space<vmem>>, %arg3: memref<48x16xbf16, #tpu.memory_space<vmem>>, %arg4: memref<16x48xf32, #tpu.memory_space<vmem>>, %arg5: memref<6x32x32xf32, #tpu.memory_space<vmem>>, %arg6: memref<6x1x32xf32, #tpu.memory_space<vmem>>, %arg7: memref<2x32x32xf32, #tpu.memory_space<vmem>>, %arg8: memref<1x32xf32, #tpu.memory_space<vmem>>, %arg9: memref<32x64xf32, #tpu.memory_space<vmem>>, %arg10: memref<1x64xf32, #tpu.memory_space<vmem>>, %arg11: memref<64x64xf32, #tpu.memory_space<vmem>>, %arg12: memref<1x64xf32, #tpu.memory_space<vmem>>, %arg13: memref<64x256xf32, #tpu.memory_space<vmem>>, %arg14: memref<1x256xf32, #tpu.memory_space<vmem>>, %arg15: memref<1x4xf32, #tpu.memory_space<vmem>>, %arg16: memref<2x32x16xf32, #tpu.memory_space<vmem>>, %arg17: memref<3x4x16xf32, #tpu.memory_space<vmem>>, %arg18: memref<2x16x16xf32, #tpu.memory_space<vmem>>, %arg19: memref<2x16x32xf32, #tpu.memory_space<vmem>>, %arg20: memref<4x1x16xf32, #tpu.memory_space<vmem>>, %arg21: memref<2x1x32xf32, #tpu.memory_space<vmem>>, %arg22: memref<3x32x16xf32, #tpu.memory_space<vmem>>, %arg23: memref<1x16xf32, #tpu.memory_space<vmem>>, %arg24: memref<16x16xf32, #tpu.memory_space<vmem>>, %arg25: memref<1x16xf32, #tpu.memory_space<vmem>>, %arg26: memref<16x128xf32, #tpu.memory_space<vmem>>, %arg27: memref<1x128xf32, #tpu.memory_space<vmem>>, %arg28: memref<48x128xf32, #tpu.memory_space<vmem>>) attributes {dimension_semantics = [], scalar_prefetch = 0 : i64, scratch_operands = 0 : i64, tpu.core_type = #tpu.core_type<tc>} {
    %c0 = arith.constant 0 : index
    %c0_0 = arith.constant 0 : index
    %0 = vector.load %arg2[%c0, %c0_0] : memref<48x16xbf16, #tpu.memory_space<vmem>>, vector<48x16xbf16>
    %c0_1 = arith.constant 0 : index
    %c0_2 = arith.constant 0 : index
    %1 = vector.load %arg3[%c0_1, %c0_2] : memref<48x16xbf16, #tpu.memory_space<vmem>>, vector<48x16xbf16>
    %c0_3 = arith.constant 0 : index
    %c0_4 = arith.constant 0 : index
    %2 = vector.load %arg4[%c0_3, %c0_4] : memref<16x48xf32, #tpu.memory_space<vmem>>, vector<16x48xf32>
    %c0_5 = arith.constant 0 : index
    %c0_6 = arith.constant 0 : index
    %3 = vector.load %arg0[%c0_5, %c0_6] : memref<16x32xf32, #tpu.memory_space<vmem>>, vector<16x32xf32>
    %c0_7 = arith.constant 0 : index
    %c0_8 = arith.constant 0 : index
    %c0_9 = arith.constant 0 : index
    %4 = vector.load %arg5[%c0_7, %c0_8, %c0_9] : memref<6x32x32xf32, #tpu.memory_space<vmem>>, vector<1x32x32xf32>
    %5 = vector.shape_cast %4 : vector<1x32x32xf32> to vector<32x32xf32>
    %cst = arith.constant dense<0.000000e+00> : vector<16x32xf32>
    %6 = tpu.matmul %3, %5, %cst {dimension_numbers = #tpu.dot_dimension_numbers<[1], [0], [0], [1], [0, 0, 1, 1], [], []>} : vector<16x32xf32>, vector<32x32xf32>, vector<16x32xf32> -> vector<16x32xf32>
    %c0_10 = arith.constant 0 : index
    %c0_11 = arith.constant 0 : index
    %c0_12 = arith.constant 0 : index
    %7 = vector.load %arg6[%c0_10, %c0_11, %c0_12] : memref<6x1x32xf32, #tpu.memory_space<vmem>>, vector<1x1x32xf32>
    %8 = vector.shape_cast %7 : vector<1x1x32xf32> to vector<1x32xf32>
    %9 = vector.broadcast %8 : vector<1x32xf32> to vector<16x32xf32>
    %10 = arith.addf %6, %9 : vector<16x32xf32>
    %cst_13 = arith.constant 0.000000e+00 : f32
    %11 = vector.broadcast %cst_13 : f32 to vector<16x32xf32>
    %12 = arith.maximumf %10, %11 : vector<16x32xf32>
    %c1 = arith.constant 1 : index
    %c0_14 = arith.constant 0 : index
    %c0_15 = arith.constant 0 : index
    %13 = vector.load %arg5[%c1, %c0_14, %c0_15] : memref<6x32x32xf32, #tpu.memory_space<vmem>>, vector<1x32x32xf32>
    %14 = vector.shape_cast %13 : vector<1x32x32xf32> to vector<32x32xf32>
    %cst_16 = arith.constant dense<0.000000e+00> : vector<16x32xf32>
    %15 = tpu.matmul %12, %14, %cst_16 {dimension_numbers = #tpu.dot_dimension_numbers<[1], [0], [0], [1], [0, 0, 1, 1], [], []>} : vector<16x32xf32>, vector<32x32xf32>, vector<16x32xf32> -> vector<16x32xf32>
    %c1_17 = arith.constant 1 : index
    %c0_18 = arith.constant 0 : index
    %c0_19 = arith.constant 0 : index
    %16 = vector.load %arg6[%c1_17, %c0_18, %c0_19] : memref<6x1x32xf32, #tpu.memory_space<vmem>>, vector<1x1x32xf32>
    %17 = vector.shape_cast %16 : vector<1x1x32xf32> to vector<1x32xf32>
    %18 = vector.broadcast %17 : vector<1x32xf32> to vector<16x32xf32>
    %19 = arith.addf %15, %18 : vector<16x32xf32>
    %cst_20 = arith.constant 0.000000e+00 : f32
    %20 = vector.broadcast %cst_20 : f32 to vector<16x32xf32>
    %21 = arith.maximumf %19, %20 : vector<16x32xf32>
    %c2 = arith.constant 2 : index
    %c0_21 = arith.constant 0 : index
    %c0_22 = arith.constant 0 : index
    %22 = vector.load %arg5[%c2, %c0_21, %c0_22] : memref<6x32x32xf32, #tpu.memory_space<vmem>>, vector<1x32x32xf32>
    %23 = vector.shape_cast %22 : vector<1x32x32xf32> to vector<32x32xf32>
    %cst_23 = arith.constant dense<0.000000e+00> : vector<16x32xf32>
    %24 = tpu.matmul %21, %23, %cst_23 {dimension_numbers = #tpu.dot_dimension_numbers<[1], [0], [0], [1], [0, 0, 1, 1], [], []>} : vector<16x32xf32>, vector<32x32xf32>, vector<16x32xf32> -> vector<16x32xf32>
    %c2_24 = arith.constant 2 : index
    %c0_25 = arith.constant 0 : index
    %c0_26 = arith.constant 0 : index
    %25 = vector.load %arg6[%c2_24, %c0_25, %c0_26] : memref<6x1x32xf32, #tpu.memory_space<vmem>>, vector<1x1x32xf32>
    %26 = vector.shape_cast %25 : vector<1x1x32xf32> to vector<1x32xf32>
    %27 = vector.broadcast %26 : vector<1x32xf32> to vector<16x32xf32>
    %28 = arith.addf %24, %27 : vector<16x32xf32>
    %cst_27 = arith.constant 0.000000e+00 : f32
    %29 = vector.broadcast %cst_27 : f32 to vector<16x32xf32>
    %30 = arith.subf %29, %28 : vector<16x32xf32>
    %31 = math.exp %30 : vector<16x32xf32>
    %cst_28 = arith.constant 1.000000e+00 : f32
    %32 = vector.broadcast %cst_28 : f32 to vector<16x32xf32>
    %33 = arith.addf %32, %31 : vector<16x32xf32>
    %cst_29 = arith.constant 1.000000e+00 : f32
    %34 = vector.broadcast %cst_29 : f32 to vector<16x32xf32>
    %35 = arith.divf %34, %33 : vector<16x32xf32>
    %c0_30 = arith.constant 0 : index
    %c0_31 = arith.constant 0 : index
    %36 = vector.load %arg1[%c0_30, %c0_31] : memref<48x32xf32, #tpu.memory_space<vmem>>, vector<48x32xf32>
    %c3 = arith.constant 3 : index
    %c0_32 = arith.constant 0 : index
    %c0_33 = arith.constant 0 : index
    %37 = vector.load %arg5[%c3, %c0_32, %c0_33] : memref<6x32x32xf32, #tpu.memory_space<vmem>>, vector<1x32x32xf32>
    %38 = vector.shape_cast %37 : vector<1x32x32xf32> to vector<32x32xf32>
    %cst_34 = arith.constant dense<0.000000e+00> : vector<48x32xf32>
    %39 = tpu.matmul %36, %38, %cst_34 {dimension_numbers = #tpu.dot_dimension_numbers<[1], [0], [0], [1], [0, 0, 1, 1], [], []>} : vector<48x32xf32>, vector<32x32xf32>, vector<48x32xf32> -> vector<48x32xf32>
    %c3_35 = arith.constant 3 : index
    %c0_36 = arith.constant 0 : index
    %c0_37 = arith.constant 0 : index
    %40 = vector.load %arg6[%c3_35, %c0_36, %c0_37] : memref<6x1x32xf32, #tpu.memory_space<vmem>>, vector<1x1x32xf32>
    %41 = vector.shape_cast %40 : vector<1x1x32xf32> to vector<1x32xf32>
    %42 = vector.broadcast %41 : vector<1x32xf32> to vector<48x32xf32>
    %43 = arith.addf %39, %42 : vector<48x32xf32>
    %cst_38 = arith.constant 0.000000e+00 : f32
    %44 = vector.broadcast %cst_38 : f32 to vector<48x32xf32>
    %45 = arith.maximumf %43, %44 : vector<48x32xf32>
    %c4 = arith.constant 4 : index
    %c0_39 = arith.constant 0 : index
    %c0_40 = arith.constant 0 : index
    %46 = vector.load %arg5[%c4, %c0_39, %c0_40] : memref<6x32x32xf32, #tpu.memory_space<vmem>>, vector<1x32x32xf32>
    %47 = vector.shape_cast %46 : vector<1x32x32xf32> to vector<32x32xf32>
    %cst_41 = arith.constant dense<0.000000e+00> : vector<48x32xf32>
    %48 = tpu.matmul %45, %47, %cst_41 {dimension_numbers = #tpu.dot_dimension_numbers<[1], [0], [0], [1], [0, 0, 1, 1], [], []>} : vector<48x32xf32>, vector<32x32xf32>, vector<48x32xf32> -> vector<48x32xf32>
    %c4_42 = arith.constant 4 : index
    %c0_43 = arith.constant 0 : index
    %c0_44 = arith.constant 0 : index
    %49 = vector.load %arg6[%c4_42, %c0_43, %c0_44] : memref<6x1x32xf32, #tpu.memory_space<vmem>>, vector<1x1x32xf32>
    %50 = vector.shape_cast %49 : vector<1x1x32xf32> to vector<1x32xf32>
    %51 = vector.broadcast %50 : vector<1x32xf32> to vector<48x32xf32>
    %52 = arith.addf %48, %51 : vector<48x32xf32>
    %cst_45 = arith.constant 0.000000e+00 : f32
    %53 = vector.broadcast %cst_45 : f32 to vector<48x32xf32>
    %54 = arith.maximumf %52, %53 : vector<48x32xf32>
    %c5 = arith.constant 5 : index
    %c0_46 = arith.constant 0 : index
    %c0_47 = arith.constant 0 : index
    %55 = vector.load %arg5[%c5, %c0_46, %c0_47] : memref<6x32x32xf32, #tpu.memory_space<vmem>>, vector<1x32x32xf32>
    %56 = vector.shape_cast %55 : vector<1x32x32xf32> to vector<32x32xf32>
    %cst_48 = arith.constant dense<0.000000e+00> : vector<48x32xf32>
    %57 = tpu.matmul %54, %56, %cst_48 {dimension_numbers = #tpu.dot_dimension_numbers<[1], [0], [0], [1], [0, 0, 1, 1], [], []>} : vector<48x32xf32>, vector<32x32xf32>, vector<48x32xf32> -> vector<48x32xf32>
    %c5_49 = arith.constant 5 : index
    %c0_50 = arith.constant 0 : index
    %c0_51 = arith.constant 0 : index
    %58 = vector.load %arg6[%c5_49, %c0_50, %c0_51] : memref<6x1x32xf32, #tpu.memory_space<vmem>>, vector<1x1x32xf32>
    %59 = vector.shape_cast %58 : vector<1x1x32xf32> to vector<1x32xf32>
    %60 = vector.broadcast %59 : vector<1x32xf32> to vector<48x32xf32>
    %61 = arith.addf %57, %60 : vector<48x32xf32>
    %cst_52 = arith.constant 0.000000e+00 : f32
    %62 = vector.broadcast %cst_52 : f32 to vector<48x32xf32>
    %63 = arith.subf %62, %61 : vector<48x32xf32>
    %64 = math.exp %63 : vector<48x32xf32>
    %cst_53 = arith.constant 1.000000e+00 : f32
    %65 = vector.broadcast %cst_53 : f32 to vector<48x32xf32>
    %66 = arith.addf %65, %64 : vector<48x32xf32>
    %cst_54 = arith.constant 1.000000e+00 : f32
    %67 = vector.broadcast %cst_54 : f32 to vector<48x32xf32>
    %68 = arith.divf %67, %66 : vector<48x32xf32>
    %69 = arith.truncf %35 : vector<16x32xf32> to vector<16x32xbf16>
    %cst_55 = arith.constant dense<0.000000e+00> : vector<48x32xf32>
    %70 = tpu.matmul %0, %69, %cst_55 {dimension_numbers = #tpu.dot_dimension_numbers<[1], [0], [0], [1], [0, 0, 1, 1], [], []>} : vector<48x16xbf16>, vector<16x32xbf16>, vector<48x32xf32> -> vector<48x32xf32>
    %71 = arith.mulf %70, %68 : vector<48x32xf32>
    %cst_56 = arith.constant dense<0.000000e+00> : vector<16x32xf32>
    %72 = tpu.matmul %2, %71, %cst_56 {dimension_numbers = #tpu.dot_dimension_numbers<[1], [0], [0], [1], [0, 0, 1, 1], [], []>} : vector<16x48xf32>, vector<48x32xf32>, vector<16x32xf32> -> vector<16x32xf32>
    %c0_57 = arith.constant 0 : index
    %c0_58 = arith.constant 0 : index
    %c0_59 = arith.constant 0 : index
    %73 = vector.load %arg7[%c0_57, %c0_58, %c0_59] : memref<2x32x32xf32, #tpu.memory_space<vmem>>, vector<1x32x32xf32>
    %74 = vector.shape_cast %73 : vector<1x32x32xf32> to vector<32x32xf32>
    %cst_60 = arith.constant dense<0.000000e+00> : vector<16x32xf32>
    %75 = tpu.matmul %35, %74, %cst_60 {dimension_numbers = #tpu.dot_dimension_numbers<[1], [0], [0], [1], [0, 0, 1, 1], [], []>} : vector<16x32xf32>, vector<32x32xf32>, vector<16x32xf32> -> vector<16x32xf32>
    %c1_61 = arith.constant 1 : index
    %c0_62 = arith.constant 0 : index
    %c0_63 = arith.constant 0 : index
    %76 = vector.load %arg7[%c1_61, %c0_62, %c0_63] : memref<2x32x32xf32, #tpu.memory_space<vmem>>, vector<1x32x32xf32>
    %77 = vector.shape_cast %76 : vector<1x32x32xf32> to vector<32x32xf32>
    %cst_64 = arith.constant dense<0.000000e+00> : vector<16x32xf32>
    %78 = tpu.matmul %72, %77, %cst_64 {dimension_numbers = #tpu.dot_dimension_numbers<[1], [0], [0], [1], [0, 0, 1, 1], [], []>} : vector<16x32xf32>, vector<32x32xf32>, vector<16x32xf32> -> vector<16x32xf32>
    %79 = arith.addf %75, %78 : vector<16x32xf32>
    %c0_65 = arith.constant 0 : index
    %c0_66 = arith.constant 0 : index
    %80 = vector.load %arg8[%c0_65, %c0_66] : memref<1x32xf32, #tpu.memory_space<vmem>>, vector<1x32xf32>
    %81 = vector.broadcast %80 : vector<1x32xf32> to vector<16x32xf32>
    %82 = arith.addf %79, %81 : vector<16x32xf32>
    %cst_67 = arith.constant 0.000000e+00 : f32
    %83 = vector.broadcast %cst_67 : f32 to vector<16x32xf32>
    %84 = arith.maximumf %82, %83 : vector<16x32xf32>
    %c0_68 = arith.constant 0 : index
    %c0_69 = arith.constant 0 : index
    %85 = vector.load %arg9[%c0_68, %c0_69] : memref<32x64xf32, #tpu.memory_space<vmem>>, vector<32x64xf32>
    %cst_70 = arith.constant dense<0.000000e+00> : vector<48x64xf32>
    %86 = tpu.matmul %68, %85, %cst_70 {dimension_numbers = #tpu.dot_dimension_numbers<[1], [0], [0], [1], [0, 0, 1, 1], [], []>} : vector<48x32xf32>, vector<32x64xf32>, vector<48x64xf32> -> vector<48x64xf32>
    %c0_71 = arith.constant 0 : index
    %c0_72 = arith.constant 0 : index
    %87 = vector.load %arg10[%c0_71, %c0_72] : memref<1x64xf32, #tpu.memory_space<vmem>>, vector<1x64xf32>
    %88 = vector.broadcast %87 : vector<1x64xf32> to vector<48x64xf32>
    %89 = arith.addf %86, %88 : vector<48x64xf32>
    %cst_73 = arith.constant 0.000000e+00 : f32
    %90 = vector.broadcast %cst_73 : f32 to vector<48x64xf32>
    %91 = arith.maximumf %89, %90 : vector<48x64xf32>
    %c0_74 = arith.constant 0 : index
    %c0_75 = arith.constant 0 : index
    %92 = vector.load %arg11[%c0_74, %c0_75] : memref<64x64xf32, #tpu.memory_space<vmem>>, vector<64x64xf32>
    %cst_76 = arith.constant dense<0.000000e+00> : vector<48x64xf32>
    %93 = tpu.matmul %91, %92, %cst_76 {dimension_numbers = #tpu.dot_dimension_numbers<[1], [0], [0], [1], [0, 0, 1, 1], [], []>} : vector<48x64xf32>, vector<64x64xf32>, vector<48x64xf32> -> vector<48x64xf32>
    %c0_77 = arith.constant 0 : index
    %c0_78 = arith.constant 0 : index
    %94 = vector.load %arg12[%c0_77, %c0_78] : memref<1x64xf32, #tpu.memory_space<vmem>>, vector<1x64xf32>
    %95 = vector.broadcast %94 : vector<1x64xf32> to vector<48x64xf32>
    %96 = arith.addf %93, %95 : vector<48x64xf32>
    %cst_79 = arith.constant 0.000000e+00 : f32
    %97 = vector.broadcast %cst_79 : f32 to vector<48x64xf32>
    %98 = arith.maximumf %96, %97 : vector<48x64xf32>
    %c0_80 = arith.constant 0 : index
    %c0_81 = arith.constant 0 : index
    %99 = vector.load %arg13[%c0_80, %c0_81] : memref<64x256xf32, #tpu.memory_space<vmem>>, vector<64x256xf32>
    %cst_82 = arith.constant dense<0.000000e+00> : vector<48x256xf32>
    %100 = tpu.matmul %98, %99, %cst_82 {dimension_numbers = #tpu.dot_dimension_numbers<[1], [0], [0], [1], [0, 0, 1, 1], [], []>} : vector<48x64xf32>, vector<64x256xf32>, vector<48x256xf32> -> vector<48x256xf32>
    %c0_83 = arith.constant 0 : index
    %c0_84 = arith.constant 0 : index
    %101 = vector.load %arg14[%c0_83, %c0_84] : memref<1x256xf32, #tpu.memory_space<vmem>>, vector<1x256xf32>
    %102 = vector.broadcast %101 : vector<1x256xf32> to vector<48x256xf32>
    %103 = arith.addf %100, %102 : vector<48x256xf32>
    %cst_85 = arith.constant 0.000000e+00 : f32
    %104 = vector.broadcast %cst_85 : f32 to vector<48x256xf32>
    %105 = arith.subf %104, %103 : vector<48x256xf32>
    %106 = math.exp %105 : vector<48x256xf32>
    %cst_86 = arith.constant 1.000000e+00 : f32
    %107 = vector.broadcast %cst_86 : f32 to vector<48x256xf32>
    %108 = arith.addf %107, %106 : vector<48x256xf32>
    %cst_87 = arith.constant 1.000000e+00 : f32
    %109 = vector.broadcast %cst_87 : f32 to vector<48x256xf32>
    %110 = arith.divf %109, %108 : vector<48x256xf32>
    %111 = arith.truncf %84 : vector<16x32xf32> to vector<16x32xbf16>
    %cst_88 = arith.constant dense<0.000000e+00> : vector<48x32xf32>
    %112 = tpu.matmul %0, %111, %cst_88 {dimension_numbers = #tpu.dot_dimension_numbers<[1], [0], [0], [1], [0, 0, 1, 1], [], []>} : vector<48x16xbf16>, vector<16x32xbf16>, vector<48x32xf32> -> vector<48x32xf32>
    %113 = tpu.iota {dimensions = array<i32: 1>} : vector<1x4xi32>
    %cst_89 = arith.constant 0.000000e+00 : f32
    %114 = vector.broadcast %cst_89 : f32 to vector<48x4xf32>
    %115 = vector.extract_strided_slice %110 {offsets = [0, 0], sizes = [48, 32], strides = [1, 1]} : vector<48x256xf32> to vector<48x32xf32>
    %116 = vector.extract_strided_slice %110 {offsets = [0, 32], sizes = [48, 32], strides = [1, 1]} : vector<48x256xf32> to vector<48x32xf32>
    %117 = arith.mulf %112, %115 : vector<48x32xf32>
    %118 = arith.mulf %70, %116 : vector<48x32xf32>
    %119 = arith.addf %117, %118 : vector<48x32xf32>
    %cst_90 = arith.constant dense<0.000000e+00> : vector<48xf32>
    %120 = vector.multi_reduction <add>, %119, %cst_90 [1] : vector<48x32xf32> to vector<48xf32>
    %121 = vector.shape_cast %120 : vector<48xf32> to vector<48x1xf32>
    %c0_i32 = arith.constant 0 : i32
    %122 = vector.broadcast %c0_i32 : i32 to vector<1x4xi32>
    %123 = arith.cmpi eq, %113, %122 : vector<1x4xi32>
    %124 = arith.extui %123 : vector<1x4xi1> to vector<1x4xi32>
    %125 = arith.sitofp %124 : vector<1x4xi32> to vector<1x4xf32>
    %126 = vector.broadcast %121 : vector<48x1xf32> to vector<48x4xf32>
    %127 = vector.broadcast %125 : vector<1x4xf32> to vector<48x4xf32>
    %128 = arith.mulf %126, %127 : vector<48x4xf32>
    %129 = arith.addf %114, %128 : vector<48x4xf32>
    %130 = vector.extract_strided_slice %110 {offsets = [0, 64], sizes = [48, 32], strides = [1, 1]} : vector<48x256xf32> to vector<48x32xf32>
    %131 = vector.extract_strided_slice %110 {offsets = [0, 96], sizes = [48, 32], strides = [1, 1]} : vector<48x256xf32> to vector<48x32xf32>
    %132 = arith.mulf %112, %130 : vector<48x32xf32>
    %133 = arith.mulf %70, %131 : vector<48x32xf32>
    %134 = arith.addf %132, %133 : vector<48x32xf32>
    %cst_91 = arith.constant dense<0.000000e+00> : vector<48xf32>
    %135 = vector.multi_reduction <add>, %134, %cst_91 [1] : vector<48x32xf32> to vector<48xf32>
    %136 = vector.shape_cast %135 : vector<48xf32> to vector<48x1xf32>
    %c1_i32 = arith.constant 1 : i32
    %137 = vector.broadcast %c1_i32 : i32 to vector<1x4xi32>
    %138 = arith.cmpi eq, %113, %137 : vector<1x4xi32>
    %139 = arith.extui %138 : vector<1x4xi1> to vector<1x4xi32>
    %140 = arith.sitofp %139 : vector<1x4xi32> to vector<1x4xf32>
    %141 = vector.broadcast %136 : vector<48x1xf32> to vector<48x4xf32>
    %142 = vector.broadcast %140 : vector<1x4xf32> to vector<48x4xf32>
    %143 = arith.mulf %141, %142 : vector<48x4xf32>
    %144 = arith.addf %129, %143 : vector<48x4xf32>
    %145 = vector.extract_strided_slice %110 {offsets = [0, 128], sizes = [48, 32], strides = [1, 1]} : vector<48x256xf32> to vector<48x32xf32>
    %146 = vector.extract_strided_slice %110 {offsets = [0, 160], sizes = [48, 32], strides = [1, 1]} : vector<48x256xf32> to vector<48x32xf32>
    %147 = arith.mulf %112, %145 : vector<48x32xf32>
    %148 = arith.mulf %70, %146 : vector<48x32xf32>
    %149 = arith.addf %147, %148 : vector<48x32xf32>
    %cst_92 = arith.constant dense<0.000000e+00> : vector<48xf32>
    %150 = vector.multi_reduction <add>, %149, %cst_92 [1] : vector<48x32xf32> to vector<48xf32>
    %151 = vector.shape_cast %150 : vector<48xf32> to vector<48x1xf32>
    %c2_i32 = arith.constant 2 : i32
    %152 = vector.broadcast %c2_i32 : i32 to vector<1x4xi32>
    %153 = arith.cmpi eq, %113, %152 : vector<1x4xi32>
    %154 = arith.extui %153 : vector<1x4xi1> to vector<1x4xi32>
    %155 = arith.sitofp %154 : vector<1x4xi32> to vector<1x4xf32>
    %156 = vector.broadcast %151 : vector<48x1xf32> to vector<48x4xf32>
    %157 = vector.broadcast %155 : vector<1x4xf32> to vector<48x4xf32>
    %158 = arith.mulf %156, %157 : vector<48x4xf32>
    %159 = arith.addf %144, %158 : vector<48x4xf32>
    %160 = vector.extract_strided_slice %110 {offsets = [0, 192], sizes = [48, 32], strides = [1, 1]} : vector<48x256xf32> to vector<48x32xf32>
    %161 = vector.extract_strided_slice %110 {offsets = [0, 224], sizes = [48, 32], strides = [1, 1]} : vector<48x256xf32> to vector<48x32xf32>
    %162 = arith.mulf %112, %160 : vector<48x32xf32>
    %163 = arith.mulf %70, %161 : vector<48x32xf32>
    %164 = arith.addf %162, %163 : vector<48x32xf32>
    %cst_93 = arith.constant dense<0.000000e+00> : vector<48xf32>
    %165 = vector.multi_reduction <add>, %164, %cst_93 [1] : vector<48x32xf32> to vector<48xf32>
    %166 = vector.shape_cast %165 : vector<48xf32> to vector<48x1xf32>
    %c3_i32 = arith.constant 3 : i32
    %167 = vector.broadcast %c3_i32 : i32 to vector<1x4xi32>
    %168 = arith.cmpi eq, %113, %167 : vector<1x4xi32>
    %169 = arith.extui %168 : vector<1x4xi1> to vector<1x4xi32>
    %170 = arith.sitofp %169 : vector<1x4xi32> to vector<1x4xf32>
    %171 = vector.broadcast %166 : vector<48x1xf32> to vector<48x4xf32>
    %172 = vector.broadcast %170 : vector<1x4xf32> to vector<48x4xf32>
    %173 = arith.mulf %171, %172 : vector<48x4xf32>
    %174 = arith.addf %159, %173 : vector<48x4xf32>
    %cst_94 = arith.constant dense<0.000000e+00> : vector<16x4xf32>
    %175 = tpu.matmul %2, %174, %cst_94 {dimension_numbers = #tpu.dot_dimension_numbers<[1], [0], [0], [1], [0, 0, 1, 1], [], []>} : vector<16x48xf32>, vector<48x4xf32>, vector<16x4xf32> -> vector<16x4xf32>
    %c0_95 = arith.constant 0 : index
    %c0_96 = arith.constant 0 : index
    %176 = vector.load %arg15[%c0_95, %c0_96] : memref<1x4xf32, #tpu.memory_space<vmem>>, vector<1x4xf32>
    %177 = vector.broadcast %176 : vector<1x4xf32> to vector<16x4xf32>
    %178 = arith.addf %175, %177 : vector<16x4xf32>
    %179 = arith.truncf %178 : vector<16x4xf32> to vector<16x4xbf16>
    %cst_97 = arith.constant dense<0.000000e+00> : vector<48x4xf32>
    %180 = tpu.matmul %0, %179, %cst_97 {dimension_numbers = #tpu.dot_dimension_numbers<[1], [0], [0], [1], [0, 0, 1, 1], [], []>} : vector<48x16xbf16>, vector<16x4xbf16>, vector<48x4xf32> -> vector<48x4xf32>
    %181 = arith.truncf %178 : vector<16x4xf32> to vector<16x4xbf16>
    %cst_98 = arith.constant dense<0.000000e+00> : vector<48x4xf32>
    %182 = tpu.matmul %1, %181, %cst_98 {dimension_numbers = #tpu.dot_dimension_numbers<[1], [0], [0], [1], [0, 0, 1, 1], [], []>} : vector<48x16xbf16>, vector<16x4xbf16>, vector<48x4xf32> -> vector<48x4xf32>
    %c0_99 = arith.constant 0 : index
    %c0_100 = arith.constant 0 : index
    %c0_101 = arith.constant 0 : index
    %183 = vector.load %arg16[%c0_99, %c0_100, %c0_101] : memref<2x32x16xf32, #tpu.memory_space<vmem>>, vector<1x32x16xf32>
    %184 = vector.shape_cast %183 : vector<1x32x16xf32> to vector<32x16xf32>
    %cst_102 = arith.constant dense<0.000000e+00> : vector<48x16xf32>
    %185 = tpu.matmul %68, %184, %cst_102 {dimension_numbers = #tpu.dot_dimension_numbers<[1], [0], [0], [1], [0, 0, 1, 1], [], []>} : vector<48x32xf32>, vector<32x16xf32>, vector<48x16xf32> -> vector<48x16xf32>
    %c0_103 = arith.constant 0 : index
    %c0_104 = arith.constant 0 : index
    %c0_105 = arith.constant 0 : index
    %186 = vector.load %arg17[%c0_103, %c0_104, %c0_105] : memref<3x4x16xf32, #tpu.memory_space<vmem>>, vector<1x4x16xf32>
    %187 = vector.shape_cast %186 : vector<1x4x16xf32> to vector<4x16xf32>
    %cst_106 = arith.constant dense<0.000000e+00> : vector<48x16xf32>
    %188 = tpu.matmul %180, %187, %cst_106 {dimension_numbers = #tpu.dot_dimension_numbers<[1], [0], [0], [1], [0, 0, 1, 1], [], []>} : vector<48x4xf32>, vector<4x16xf32>, vector<48x16xf32> -> vector<48x16xf32>
    %189 = arith.addf %185, %188 : vector<48x16xf32>
    %c1_107 = arith.constant 1 : index
    %c0_108 = arith.constant 0 : index
    %c0_109 = arith.constant 0 : index
    %190 = vector.load %arg17[%c1_107, %c0_108, %c0_109] : memref<3x4x16xf32, #tpu.memory_space<vmem>>, vector<1x4x16xf32>
    %191 = vector.shape_cast %190 : vector<1x4x16xf32> to vector<4x16xf32>
    %cst_110 = arith.constant dense<0.000000e+00> : vector<48x16xf32>
    %192 = tpu.matmul %182, %191, %cst_110 {dimension_numbers = #tpu.dot_dimension_numbers<[1], [0], [0], [1], [0, 0, 1, 1], [], []>} : vector<48x4xf32>, vector<4x16xf32>, vector<48x16xf32> -> vector<48x16xf32>
    %193 = arith.addf %189, %192 : vector<48x16xf32>
    %c0_111 = arith.constant 0 : index
    %c0_112 = arith.constant 0 : index
    %c0_113 = arith.constant 0 : index
    %194 = vector.load %arg20[%c0_111, %c0_112, %c0_113] : memref<4x1x16xf32, #tpu.memory_space<vmem>>, vector<1x1x16xf32>
    %195 = vector.shape_cast %194 : vector<1x1x16xf32> to vector<1x16xf32>
    %196 = vector.broadcast %195 : vector<1x16xf32> to vector<48x16xf32>
    %197 = arith.addf %193, %196 : vector<48x16xf32>
    %cst_114 = arith.constant 0.000000e+00 : f32
    %198 = vector.broadcast %cst_114 : f32 to vector<48x16xf32>
    %199 = arith.maximumf %197, %198 : vector<48x16xf32>
    %c0_115 = arith.constant 0 : index
    %c0_116 = arith.constant 0 : index
    %c0_117 = arith.constant 0 : index
    %200 = vector.load %arg18[%c0_115, %c0_116, %c0_117] : memref<2x16x16xf32, #tpu.memory_space<vmem>>, vector<1x16x16xf32>
    %201 = vector.shape_cast %200 : vector<1x16x16xf32> to vector<16x16xf32>
    %cst_118 = arith.constant dense<0.000000e+00> : vector<48x16xf32>
    %202 = tpu.matmul %199, %201, %cst_118 {dimension_numbers = #tpu.dot_dimension_numbers<[1], [0], [0], [1], [0, 0, 1, 1], [], []>} : vector<48x16xf32>, vector<16x16xf32>, vector<48x16xf32> -> vector<48x16xf32>
    %c1_119 = arith.constant 1 : index
    %c0_120 = arith.constant 0 : index
    %c0_121 = arith.constant 0 : index
    %203 = vector.load %arg20[%c1_119, %c0_120, %c0_121] : memref<4x1x16xf32, #tpu.memory_space<vmem>>, vector<1x1x16xf32>
    %204 = vector.shape_cast %203 : vector<1x1x16xf32> to vector<1x16xf32>
    %205 = vector.broadcast %204 : vector<1x16xf32> to vector<48x16xf32>
    %206 = arith.addf %202, %205 : vector<48x16xf32>
    %cst_122 = arith.constant 0.000000e+00 : f32
    %207 = vector.broadcast %cst_122 : f32 to vector<48x16xf32>
    %208 = arith.maximumf %206, %207 : vector<48x16xf32>
    %c0_123 = arith.constant 0 : index
    %c0_124 = arith.constant 0 : index
    %c0_125 = arith.constant 0 : index
    %209 = vector.load %arg19[%c0_123, %c0_124, %c0_125] : memref<2x16x32xf32, #tpu.memory_space<vmem>>, vector<1x16x32xf32>
    %210 = vector.shape_cast %209 : vector<1x16x32xf32> to vector<16x32xf32>
    %cst_126 = arith.constant dense<0.000000e+00> : vector<48x32xf32>
    %211 = tpu.matmul %208, %210, %cst_126 {dimension_numbers = #tpu.dot_dimension_numbers<[1], [0], [0], [1], [0, 0, 1, 1], [], []>} : vector<48x16xf32>, vector<16x32xf32>, vector<48x32xf32> -> vector<48x32xf32>
    %c0_127 = arith.constant 0 : index
    %c0_128 = arith.constant 0 : index
    %c0_129 = arith.constant 0 : index
    %212 = vector.load %arg21[%c0_127, %c0_128, %c0_129] : memref<2x1x32xf32, #tpu.memory_space<vmem>>, vector<1x1x32xf32>
    %213 = vector.shape_cast %212 : vector<1x1x32xf32> to vector<1x32xf32>
    %214 = vector.broadcast %213 : vector<1x32xf32> to vector<48x32xf32>
    %215 = arith.addf %211, %214 : vector<48x32xf32>
    %cst_130 = arith.constant 0.000000e+00 : f32
    %216 = vector.broadcast %cst_130 : f32 to vector<48x32xf32>
    %217 = arith.subf %216, %215 : vector<48x32xf32>
    %218 = math.exp %217 : vector<48x32xf32>
    %cst_131 = arith.constant 1.000000e+00 : f32
    %219 = vector.broadcast %cst_131 : f32 to vector<48x32xf32>
    %220 = arith.addf %219, %218 : vector<48x32xf32>
    %cst_132 = arith.constant 1.000000e+00 : f32
    %221 = vector.broadcast %cst_132 : f32 to vector<48x32xf32>
    %222 = arith.divf %221, %220 : vector<48x32xf32>
    %cst_133 = arith.constant dense<0.000000e+00> : vector<16x32xf32>
    %223 = tpu.matmul %2, %222, %cst_133 {dimension_numbers = #tpu.dot_dimension_numbers<[1], [0], [0], [1], [0, 0, 1, 1], [], []>} : vector<16x48xf32>, vector<48x32xf32>, vector<16x32xf32> -> vector<16x32xf32>
    %c2_134 = arith.constant 2 : index
    %c0_135 = arith.constant 0 : index
    %c0_136 = arith.constant 0 : index
    %224 = vector.load %arg17[%c2_134, %c0_135, %c0_136] : memref<3x4x16xf32, #tpu.memory_space<vmem>>, vector<1x4x16xf32>
    %225 = vector.shape_cast %224 : vector<1x4x16xf32> to vector<4x16xf32>
    %cst_137 = arith.constant dense<0.000000e+00> : vector<16x16xf32>
    %226 = tpu.matmul %178, %225, %cst_137 {dimension_numbers = #tpu.dot_dimension_numbers<[1], [0], [0], [1], [0, 0, 1, 1], [], []>} : vector<16x4xf32>, vector<4x16xf32>, vector<16x16xf32> -> vector<16x16xf32>
    %c1_138 = arith.constant 1 : index
    %c0_139 = arith.constant 0 : index
    %c0_140 = arith.constant 0 : index
    %227 = vector.load %arg16[%c1_138, %c0_139, %c0_140] : memref<2x32x16xf32, #tpu.memory_space<vmem>>, vector<1x32x16xf32>
    %228 = vector.shape_cast %227 : vector<1x32x16xf32> to vector<32x16xf32>
    %cst_141 = arith.constant dense<0.000000e+00> : vector<16x16xf32>
    %229 = tpu.matmul %223, %228, %cst_141 {dimension_numbers = #tpu.dot_dimension_numbers<[1], [0], [0], [1], [0, 0, 1, 1], [], []>} : vector<16x32xf32>, vector<32x16xf32>, vector<16x16xf32> -> vector<16x16xf32>
    %230 = arith.addf %226, %229 : vector<16x16xf32>
    %c2_142 = arith.constant 2 : index
    %c0_143 = arith.constant 0 : index
    %c0_144 = arith.constant 0 : index
    %231 = vector.load %arg20[%c2_142, %c0_143, %c0_144] : memref<4x1x16xf32, #tpu.memory_space<vmem>>, vector<1x1x16xf32>
    %232 = vector.shape_cast %231 : vector<1x1x16xf32> to vector<1x16xf32>
    %233 = vector.broadcast %232 : vector<1x16xf32> to vector<16x16xf32>
    %234 = arith.addf %230, %233 : vector<16x16xf32>
    %cst_145 = arith.constant 0.000000e+00 : f32
    %235 = vector.broadcast %cst_145 : f32 to vector<16x16xf32>
    %236 = arith.maximumf %234, %235 : vector<16x16xf32>
    %c1_146 = arith.constant 1 : index
    %c0_147 = arith.constant 0 : index
    %c0_148 = arith.constant 0 : index
    %237 = vector.load %arg18[%c1_146, %c0_147, %c0_148] : memref<2x16x16xf32, #tpu.memory_space<vmem>>, vector<1x16x16xf32>
    %238 = vector.shape_cast %237 : vector<1x16x16xf32> to vector<16x16xf32>
    %cst_149 = arith.constant dense<0.000000e+00> : vector<16x16xf32>
    %239 = tpu.matmul %236, %238, %cst_149 {dimension_numbers = #tpu.dot_dimension_numbers<[1], [0], [0], [1], [0, 0, 1, 1], [], []>} : vector<16x16xf32>, vector<16x16xf32>, vector<16x16xf32> -> vector<16x16xf32>
    %c3_150 = arith.constant 3 : index
    %c0_151 = arith.constant 0 : index
    %c0_152 = arith.constant 0 : index
    %240 = vector.load %arg20[%c3_150, %c0_151, %c0_152] : memref<4x1x16xf32, #tpu.memory_space<vmem>>, vector<1x1x16xf32>
    %241 = vector.shape_cast %240 : vector<1x1x16xf32> to vector<1x16xf32>
    %242 = vector.broadcast %241 : vector<1x16xf32> to vector<16x16xf32>
    %243 = arith.addf %239, %242 : vector<16x16xf32>
    %cst_153 = arith.constant 0.000000e+00 : f32
    %244 = vector.broadcast %cst_153 : f32 to vector<16x16xf32>
    %245 = arith.maximumf %243, %244 : vector<16x16xf32>
    %c1_154 = arith.constant 1 : index
    %c0_155 = arith.constant 0 : index
    %c0_156 = arith.constant 0 : index
    %246 = vector.load %arg19[%c1_154, %c0_155, %c0_156] : memref<2x16x32xf32, #tpu.memory_space<vmem>>, vector<1x16x32xf32>
    %247 = vector.shape_cast %246 : vector<1x16x32xf32> to vector<16x32xf32>
    %cst_157 = arith.constant dense<0.000000e+00> : vector<16x32xf32>
    %248 = tpu.matmul %245, %247, %cst_157 {dimension_numbers = #tpu.dot_dimension_numbers<[1], [0], [0], [1], [0, 0, 1, 1], [], []>} : vector<16x16xf32>, vector<16x32xf32>, vector<16x32xf32> -> vector<16x32xf32>
    %c1_158 = arith.constant 1 : index
    %c0_159 = arith.constant 0 : index
    %c0_160 = arith.constant 0 : index
    %249 = vector.load %arg21[%c1_158, %c0_159, %c0_160] : memref<2x1x32xf32, #tpu.memory_space<vmem>>, vector<1x1x32xf32>
    %250 = vector.shape_cast %249 : vector<1x1x32xf32> to vector<1x32xf32>
    %251 = vector.broadcast %250 : vector<1x32xf32> to vector<16x32xf32>
    %252 = arith.addf %248, %251 : vector<16x32xf32>
    %cst_161 = arith.constant 0.000000e+00 : f32
    %253 = vector.broadcast %cst_161 : f32 to vector<16x32xf32>
    %254 = arith.subf %253, %252 : vector<16x32xf32>
    %255 = math.exp %254 : vector<16x32xf32>
    %cst_162 = arith.constant 1.000000e+00 : f32
    %256 = vector.broadcast %cst_162 : f32 to vector<16x32xf32>
    %257 = arith.addf %256, %255 : vector<16x32xf32>
    %cst_163 = arith.constant 1.000000e+00 : f32
    %258 = vector.broadcast %cst_163 : f32 to vector<16x32xf32>
    %259 = arith.divf %258, %257 : vector<16x32xf32>
    %260 = arith.truncf %259 : vector<16x32xf32> to vector<16x32xbf16>
    %cst_164 = arith.constant dense<0.000000e+00> : vector<48x32xf32>
    %261 = tpu.matmul %0, %260, %cst_164 {dimension_numbers = #tpu.dot_dimension_numbers<[1], [0], [0], [1], [0, 0, 1, 1], [], []>} : vector<48x16xbf16>, vector<16x32xbf16>, vector<48x32xf32> -> vector<48x32xf32>
    %262 = arith.truncf %259 : vector<16x32xf32> to vector<16x32xbf16>
    %cst_165 = arith.constant dense<0.000000e+00> : vector<48x32xf32>
    %263 = tpu.matmul %1, %262, %cst_165 {dimension_numbers = #tpu.dot_dimension_numbers<[1], [0], [0], [1], [0, 0, 1, 1], [], []>} : vector<48x16xbf16>, vector<16x32xbf16>, vector<48x32xf32> -> vector<48x32xf32>
    %c0_166 = arith.constant 0 : index
    %c0_167 = arith.constant 0 : index
    %c0_168 = arith.constant 0 : index
    %264 = vector.load %arg22[%c0_166, %c0_167, %c0_168] : memref<3x32x16xf32, #tpu.memory_space<vmem>>, vector<1x32x16xf32>
    %265 = vector.shape_cast %264 : vector<1x32x16xf32> to vector<32x16xf32>
    %cst_169 = arith.constant dense<0.000000e+00> : vector<48x16xf32>
    %266 = tpu.matmul %222, %265, %cst_169 {dimension_numbers = #tpu.dot_dimension_numbers<[1], [0], [0], [1], [0, 0, 1, 1], [], []>} : vector<48x32xf32>, vector<32x16xf32>, vector<48x16xf32> -> vector<48x16xf32>
    %c1_170 = arith.constant 1 : index
    %c0_171 = arith.constant 0 : index
    %c0_172 = arith.constant 0 : index
    %267 = vector.load %arg22[%c1_170, %c0_171, %c0_172] : memref<3x32x16xf32, #tpu.memory_space<vmem>>, vector<1x32x16xf32>
    %268 = vector.shape_cast %267 : vector<1x32x16xf32> to vector<32x16xf32>
    %cst_173 = arith.constant dense<0.000000e+00> : vector<48x16xf32>
    %269 = tpu.matmul %261, %268, %cst_173 {dimension_numbers = #tpu.dot_dimension_numbers<[1], [0], [0], [1], [0, 0, 1, 1], [], []>} : vector<48x32xf32>, vector<32x16xf32>, vector<48x16xf32> -> vector<48x16xf32>
    %270 = arith.addf %266, %269 : vector<48x16xf32>
    %c2_174 = arith.constant 2 : index
    %c0_175 = arith.constant 0 : index
    %c0_176 = arith.constant 0 : index
    %271 = vector.load %arg22[%c2_174, %c0_175, %c0_176] : memref<3x32x16xf32, #tpu.memory_space<vmem>>, vector<1x32x16xf32>
    %272 = vector.shape_cast %271 : vector<1x32x16xf32> to vector<32x16xf32>
    %cst_177 = arith.constant dense<0.000000e+00> : vector<48x16xf32>
    %273 = tpu.matmul %263, %272, %cst_177 {dimension_numbers = #tpu.dot_dimension_numbers<[1], [0], [0], [1], [0, 0, 1, 1], [], []>} : vector<48x32xf32>, vector<32x16xf32>, vector<48x16xf32> -> vector<48x16xf32>
    %274 = arith.addf %270, %273 : vector<48x16xf32>
    %c0_178 = arith.constant 0 : index
    %c0_179 = arith.constant 0 : index
    %275 = vector.load %arg23[%c0_178, %c0_179] : memref<1x16xf32, #tpu.memory_space<vmem>>, vector<1x16xf32>
    %276 = vector.broadcast %275 : vector<1x16xf32> to vector<48x16xf32>
    %277 = arith.addf %274, %276 : vector<48x16xf32>
    %cst_180 = arith.constant 0.000000e+00 : f32
    %278 = vector.broadcast %cst_180 : f32 to vector<48x16xf32>
    %279 = arith.maximumf %277, %278 : vector<48x16xf32>
    %c0_181 = arith.constant 0 : index
    %c0_182 = arith.constant 0 : index
    %280 = vector.load %arg24[%c0_181, %c0_182] : memref<16x16xf32, #tpu.memory_space<vmem>>, vector<16x16xf32>
    %cst_183 = arith.constant dense<0.000000e+00> : vector<48x16xf32>
    %281 = tpu.matmul %279, %280, %cst_183 {dimension_numbers = #tpu.dot_dimension_numbers<[1], [0], [0], [1], [0, 0, 1, 1], [], []>} : vector<48x16xf32>, vector<16x16xf32>, vector<48x16xf32> -> vector<48x16xf32>
    %c0_184 = arith.constant 0 : index
    %c0_185 = arith.constant 0 : index
    %282 = vector.load %arg25[%c0_184, %c0_185] : memref<1x16xf32, #tpu.memory_space<vmem>>, vector<1x16xf32>
    %283 = vector.broadcast %282 : vector<1x16xf32> to vector<48x16xf32>
    %284 = arith.addf %281, %283 : vector<48x16xf32>
    %cst_186 = arith.constant 0.000000e+00 : f32
    %285 = vector.broadcast %cst_186 : f32 to vector<48x16xf32>
    %286 = arith.maximumf %284, %285 : vector<48x16xf32>
    %c0_187 = arith.constant 0 : index
    %c0_188 = arith.constant 0 : index
    %287 = vector.load %arg26[%c0_187, %c0_188] : memref<16x128xf32, #tpu.memory_space<vmem>>, vector<16x128xf32>
    %cst_189 = arith.constant dense<0.000000e+00> : vector<48x128xf32>
    %288 = tpu.matmul %286, %287, %cst_189 {dimension_numbers = #tpu.dot_dimension_numbers<[1], [0], [0], [1], [0, 0, 1, 1], [], []>} : vector<48x16xf32>, vector<16x128xf32>, vector<48x128xf32> -> vector<48x128xf32>
    %c0_190 = arith.constant 0 : index
    %c0_191 = arith.constant 0 : index
    %289 = vector.load %arg27[%c0_190, %c0_191] : memref<1x128xf32, #tpu.memory_space<vmem>>, vector<1x128xf32>
    %290 = vector.broadcast %289 : vector<1x128xf32> to vector<48x128xf32>
    %291 = arith.addf %288, %290 : vector<48x128xf32>
    %cst_192 = arith.constant 0.000000e+00 : f32
    %292 = vector.broadcast %cst_192 : f32 to vector<48x128xf32>
    %293 = arith.subf %292, %291 : vector<48x128xf32>
    %294 = math.exp %293 : vector<48x128xf32>
    %cst_193 = arith.constant 1.000000e+00 : f32
    %295 = vector.broadcast %cst_193 : f32 to vector<48x128xf32>
    %296 = arith.addf %295, %294 : vector<48x128xf32>
    %cst_194 = arith.constant 1.000000e+00 : f32
    %297 = vector.broadcast %cst_194 : f32 to vector<48x128xf32>
    %298 = arith.divf %297, %296 : vector<48x128xf32>
    %c0_195 = arith.constant 0 : index
    %c0_196 = arith.constant 0 : index
    %299 = vector.load %arg28[%c0_195, %c0_196] : memref<48x128xf32, #tpu.memory_space<vmem>>, vector<48x128xf32>
    tpu.vector_store %arg28[%c0_195, %c0_196], %298 {strides = array<i32>} : memref<48x128xf32, #tpu.memory_space<vmem>>, vector<48x128xf32>,
    return
  }
}

</mosaic_0001>

<bundles_post_ra>
// kernel: amg_forward.1
= control target key start
LH: loop header
LB: loop body
LE: loop exit
PB: predicated region body
PF: predicated region fallthrough
CT: control target
= control target key end

     0   :  { %vm117_vm0 = vcmask 261120   ;;  %vm5461_vm1 = vmmov 0   ;;  %vm851_vm2 = vcmask 130048   ;;  %vm924_vm3 = vcmask 392192   ;;  %s5464_s29 = smov 32   ;;  %s6546_s5 = inlined_call_operand.vmem [shape: f32[6,32,32], index: 5, kind: input, shape index: {}]   ;;  %s6547_s0 = inlined_call_operand.vmem [shape: f32[16,32], index: 0, kind: input, shape index: {}]   ;;  %s6548_s6 = inlined_call_operand.vmem [shape: f32[6,1,32], index: 6, kind: input, shape index: {}]   ;;  %s6549_s1 = inlined_call_operand.vmem [shape: f32[48,32], index: 1, kind: input, shape index: {}]   ;;  %s6550_s2 = inlined_call_operand.vmem [shape: bf16[48,16], index: 2, kind: input, shape index: {}]   ;;  %s6551_s9 = inlined_call_operand.vmem [shape: f32[32,64], index: 9, kind: input, shape index: {}]   ;;  %s6552_s4 = inlined_call_operand.vmem [shape: f32[16,48], index: 4, kind: input, shape index: {}]   ;;  %s6553_s7 = inlined_call_operand.vmem [shape: f32[2,32,32], index: 7, kind: input, shape index: {}]   ;;  %s6554_s11 = inlined_call_operand.vmem [shape: f32[64,64], index: 11, kind: input, shape index: {}]   ;;  %s6555_s10 = inlined_call_operand.vmem [shape: f32[1,64], index: 10, kind: input, shape index: {}]   ;;  %s6556_s13 = inlined_call_operand.vmem [shape: f32[64,256], index: 13, kind: input, shape index: {}]   ;;  %s6557_s8 = inlined_call_operand.vmem [shape: f32[1,32], index: 8, kind: input, shape index: {}]   ;;  %s6558_s12 = inlined_call_operand.vmem [shape: f32[1,64], index: 12, kind: input, shape index: {}]   ;;  %s6559_s14 = inlined_call_operand.vmem [shape: f32[1,256], index: 14, kind: input, shape index: {}]   ;;  %s6560_s3 = inlined_call_operand.vmem [shape: bf16[48,16], index: 3, kind: input, shape index: {}]   ;;  %s6561_s15 = inlined_call_operand.vmem [shape: f32[1,4], index: 15, kind: input, shape index: {}]   ;;  %s6562_s17 = inlined_call_operand.vmem [shape: f32[3,4,16], index: 17, kind: input, shape index: {}]   ;;  %s6563_s16 = inlined_call_operand.vmem [shape: f32[2,32,16], index: 16, kind: input, shape index: {}]   ;;  %s6564_s18 = inlined_call_operand.vmem [shape: f32[2,16,16], index: 18, kind: input, shape index: {}]   ;;  %s6565_s20 = inlined_call_operand.vmem [shape: f32[4,1,16], index: 20, kind: input, shape index: {}]   ;;  %s6566_s19 = inlined_call_operand.vmem [shape: f32[2,16,32], index: 19, kind: input, shape index: {}]   ;;  %s6567_s21 = inlined_call_operand.vmem [shape: f32[2,1,32], index: 21, kind: input, shape index: {}]   ;;  %s6568_s22 = inlined_call_operand.vmem [shape: f32[3,32,16], index: 22, kind: input, shape index: {}]   ;;  %s6569_s24 = inlined_call_operand.vmem [shape: f32[16,16], index: 24, kind: input, shape index: {}]   ;;  %s6570_s23 = inlined_call_operand.vmem [shape: f32[1,16], index: 23, kind: input, shape index: {}]   ;;  %s6571_s26 = inlined_call_operand.vmem [shape: f32[16,128], index: 26, kind: input, shape index: {}]   ;;  %s6572_s25 = inlined_call_operand.vmem [shape: f32[1,16], index: 25, kind: input, shape index: {}]   ;;  %s6573_s27 = inlined_call_operand.vmem [shape: f32[1,128], index: 27, kind: input, shape index: {}]   ;;  %s6574_s28 = inlined_call_operand.vmem [shape: f32[48,128], index: 28, kind: output, shape index: {}]  }
   0x1   :  { %6585 = sst [smem:[#allocation2_spill]] %s6546_s5  ;;  %vm1333_vm4 = vcmask 523264   ;;  %vm2301_vm9 = vcmask 1043456   ;;  %vm2282_vm10 = vcmask 31744  }
   0x2   :  { %6586 = sst [smem:[#allocation3_spill]] %s6547_s0 }
   0x3   :  { %6587 = sst [smem:[#allocation4_spill]] %s6548_s6 }
   0x4   :  { %6588 = sst [smem:[#allocation5_spill]] %s6549_s1 }
   0x5   :  { %6589 = sst [smem:[#allocation6_spill]] %s6550_s2 }
   0x6   :  { %6590 = sst [smem:[#allocation7_spill]] %s6551_s9  ;;  %s6602_s1 = sld [smem:[#allocation6_spill]] }
   0x7   :  { %6591 = sst [smem:[#allocation8_spill]] %s6552_s4  ;;  %s6600_s4 = sld [smem:[#allocation4_spill]] }
   0x8   :  { %6592 = sst [smem:[#allocation9_spill]] %s6553_s7  ;;  %s6599_s7 = sld [smem:[#allocation3_spill]] }
   0x9   :  { %6593 = sst [smem:[#allocation10_spill]] %s6554_s11  ;;  %s6604_s9 = sld [smem:[#allocation8_spill]] }
   0xa   :  { %6594 = sst [smem:[#allocation11_spill]] %s6555_s10  ;;  %s6598_s10 = sld [smem:[#allocation2_spill]] }
   0xb   :  { %6595 = sst [smem:[#allocation12_spill]] %s6556_s13  ;;  %s6603_s13 = sld [smem:[#allocation7_spill]] }
   0xc   :  { %6596 = sst [smem:[#allocation13_spill]] %s6557_s8  ;;  %s6605_s8 = sld [smem:[#allocation9_spill]] }
   0xd   :  { %6597 = sst [smem:[#allocation14_spill]] %s6558_s12  ;;  %v4171_v20 = vld [vmem:[%s6600_s4] ss:$0 sm:$0xff]  ;;  %s6601_s12 = sld [smem:[#allocation5_spill]]  ;;  %v4179_v42 = vld [vmem:[%s6600_s4 + $0x1] ss:$0 sm:$0xff] }
   0xe   :  { %v104_v5 = vld [vmem:[%s6599_s7] sm:$0xff]  ;;  %v105_v10 = vld [vmem:[%s6599_s7 + $0x8] sm:$0xff]  ;;  %s6606_s6 = sld [smem:[#allocation10_spill]]  ;;  %s6607_s5 = sld [smem:[#allocation11_spill]] }
   0xf   :  { %4635 = vmatprep.mubr.msk.f32.mxu0 %vm117_vm0, %v104_v5  ;;  %v4195_v52 = vld [vmem:[%s6600_s4 + $0x3] ss:$0 sm:$0xff] }
  0x10   :  { %v106_v0 = vld [vmem:[%s6598_s10] sm:$0xff]  ;;  %v107_v1 = vld [vmem:[%s6598_s10 + $0x8] sm:$0xff]  ;;  %v108_v2 = vld [vmem:[%s6598_s10 + $0x10] sm:$0xff] }
  0x11   :  { %v5076_v3 = vpack.c.bf16 %v107_v1, %v106_v0  ;;  %v109_v4 = vld [vmem:[%s6598_s10 + $0x18] sm:$0xff]  ;;  %v4174_v7 = vld [vmem:[%s6598_s10 + $0x20] sm:$0xff]  ;;  %v4175_v8 = vld [vmem:[%s6598_s10 + $0x28] sm:$0xff] }
  0x12   :  { %v5080_v6 = vpack.c.bf16 %v109_v4, %v108_v2  ;;  %v5084_v9 = vpack.c.bf16 %v4175_v8, %v4174_v7  ;;  %v4176_v11 = vld [vmem:[%s6598_s10 + $0x30] sm:$0xff]  ;;  %v4177_v12 = vld [vmem:[%s6598_s10 + $0x38] sm:$0xff]  ;;  %v4190_v14 = vld [vmem:[%s6598_s10 + $0x60] sm:$0xff] }
  0x13   :  { %5077 = vmatprep.subr.bf16.mxu0 %v5076_v3  ;;  %v5088_v13 = vpack.c.bf16 %v4177_v12, %v4176_v11  ;;  %v4191_v15 = vld [vmem:[%s6598_s10 + $0x68] sm:$0xff]  ;;  %v4182_v17 = vld [vmem:[%s6598_s10 + $0x40] sm:$0xff]  ;;  %v4192_v25 = vld [vmem:[%s6598_s10 + $0x70] sm:$0xff] }
  0x14   :  { %5079 = vmatpush3.bf16.msra.mxu0 %v5076_v3  ;;  %5085 = vmatprep.subr.bf16.mxu1 %v5084_v9  ;;  %v5100_v16 = vpack.c.bf16 %v4191_v15, %v4190_v14  ;;  %v4183_v18 = vld [vmem:[%s6598_s10 + $0x48] sm:$0xff]  ;;  %v4193_v26 = vld [vmem:[%s6598_s10 + $0x78] sm:$0xff]  ;;  %v403_v30 = vld [vmem:[%s6601_s12] sm:$0xff] }
  0x15   :  { %5081 = vmatprep.subr.bf16.mxu0 %v5080_v6  ;;  %5087 = vmatpush3.bf16.msra.mxu1 %v5084_v9  ;;  %v5092_v19 = vpack.c.bf16 %v4183_v18, %v4182_v17  ;;  %v5104_v29 = vpack.c.bf16 %v4193_v26, %v4192_v25  ;;  %v404_v31 = vld [vmem:[%s6601_s12 + $0x8] sm:$0xff]  ;;  %v405_v32 = vld [vmem:[%s6601_s12 + $0x10] sm:$0xff]  ;;  %v406_v33 = vld [vmem:[%s6601_s12 + $0x18] sm:$0xff] }
  0x16   :  { %5089 = vmatprep.subr.bf16.mxu1 %v5088_v13  ;;  %v407_v34 = vld [vmem:[%s6601_s12 + $0x20] sm:$0xff]  ;;  %v408_v35 = vld [vmem:[%s6601_s12 + $0x28] sm:$0xff]  ;;  %v4184_v36 = vld [vmem:[%s6598_s10 + $0x50] sm:$0xff] }
  0x17   :  { %v4185_v37 = vld [vmem:[%s6598_s10 + $0x58] sm:$0xff]  ;;  %v4202_v39 = vld [vmem:[%s6598_s10 + $0x80] sm:$0xff]  ;;  %v4203_v40 = vld [vmem:[%s6598_s10 + $0x88] sm:$0xff] }
  0x18   :  { %5083 = vmatpush3.bf16.msra.mxu0 %v5080_v6  ;;  %v5096_v38 = vpack.c.bf16 %v4185_v37, %v4184_v36  ;;  %v5108_v41 = vpack.c.bf16 %v4203_v40, %v4202_v39  ;;  %v4204_v47 = vld [vmem:[%s6598_s10 + $0x90] sm:$0xff]  ;;  %v4205_v48 = vld [vmem:[%s6598_s10 + $0x98] sm:$0xff]  ;;  %v4214_v7 = vld [vmem:[%s6598_s10 + $0xa0] sm:$0xff] }
  0x19   :  { %5091 = vmatpush3.bf16.msra.mxu1 %v5088_v13  ;;  %5093 = vmatprep.subr.bf16.mxu0 %v5092_v19  ;;  %v5112_v51 = vpack.c.bf16 %v4205_v48, %v4204_v47  ;;  %v4215_v8 = vld [vmem:[%s6598_s10 + $0xa8] sm:$0xff]  ;;  %v4217_v11 = vld [vmem:[%s6598_s10 + $0xb8] sm:$0xff]  ;;  %v5460_v13 = vmov 0.0   ;;  %v4187_v14 = vld [vmem:[%s6600_s4 + $0x2] ss:$0 sm:$0xff] }
  0x1a   :  { %5101 = vmatprep.subr.bf16.mxu1 %v5100_v16  ;;  %v5116_v9 = vpack.c.bf16 %v4215_v8, %v4214_v7 }
  0x1b   :  { %4636 = vmatmul.mubr.msk.f32.vlgmr.msra.gmra.mrb[0].mxu0 %vm117_vm0, %v105_v10  ;;  %v4216_v10 = vld [vmem:[%s6598_s10 + $0xb0] sm:$0xff]  ;;  %s5463_s10 = smov 96  }
  0x1c   :  { %5095 = vmatpush3.bf16.msra.mxu0 %v5092_v19  ;;  %v5120_v12 = vpack.c.bf16 %v4217_v11, %v4216_v10 }
  0x1d   :  { %5097 = vmatprep.subr.bf16.mxu0 %v5096_v38 }
  0x20   :  { %5099 = vmatpush3.bf16.msra.mxu0 %v5096_v38 }
  0x21   :  { %5109 = vmatprep.subr.bf16.mxu0 %v5108_v41 }
  0xee   :  { %v4637_v21 = vpop.f32.mrb[0].mxu0 }
  0xef   :  { %v196_v22 = vadd.f32 %v4637_v21, %v4171_v20  ;;  %v190_v23 = vpop.f32.mrb[1].mxu0 }
  0xf0   :  { %v191_v24 = vadd.f32 %v4171_v20, %v190_v23  ;;  %v4207_v23 = vld [vmem:[%s6600_s4 + $0x4] ss:$0 sm:$0xff] }
  0xf1   :  { %v200_v28 = vmax.f32 %v196_v22, 0.0 }
  0xf2   :  { %v199_v27 = vmax.f32 %v191_v24, 0.0 }
  0xf4   :  { %4646 = vmatprep.mubr.msk.f32.mxu1 %vm117_vm0, %v199_v27 }
  0xf5   :  { %4647 = vmatmul.mubr.msk.f32.vlgmr.msra.gmra.mrb[0].mxu1 %vm117_vm0, %v200_v28 }
  0xf6   :  { %5103 = vmatpush3.bf16.msra.mxu1 %v5100_v16  ;;  %4668 = vmatprep.mubr.msk.f32.mxu1 %vm117_vm0, %v403_v30 }
  0xf7   :  { %5105 = vmatprep.subr.bf16.mxu1 %v5104_v29 }
  0xfa   :  { %5107 = vmatpush3.bf16.msra.mxu1 %v5104_v29 }
  0xfb   :  { %5117 = vmatprep.subr.bf16.mxu1 %v5116_v9 }
  0xfd   :  { %4669 = vmatmul.mubr.msk.f32.vlgmr.msra.gmra.mrb[2].mxu1 %vm117_vm0, %v404_v31 }
  0xfe   :  { %4671 = vmatprep.mubr.msk.f32.mxu1 %vm117_vm0, %v405_v32  ;;  %5119 = vmatpush3.bf16.msra.mxu1 %v5116_v9 }
  0xff   :  { %5121 = vmatprep.subr.bf16.mxu1 %v5120_v12 }
 0x101   :  { %4672 = vmatmul.mubr.msk.f32.gmra.mrb[4].mxu1 %vm117_vm0, %v406_v33 }
 0x102   :  { %4674 = vmatprep.mubr.msk.f32.mxu1 %vm117_vm0, %v407_v34  ;;  %5123 = vmatpush3.bf16.msra.mxu1 %v5120_v12 }
 0x105   :  { %4675 = vmatmul.mubr.msk.f32.gmra.mrb[6].mxu1 %vm117_vm0, %v408_v35 }
 0x1c8   :  { %v4648_v43 = vpop.f32.mrb[0].mxu1 }
 0x1c9   :  { %v292_v44 = vadd.f32 %v4648_v43, %v4179_v42  ;;  %v286_v45 = vpop.f32.mrb[1].mxu1 }
 0x1ca   :  { %v287_v46 = vadd.f32 %v4179_v42, %v286_v45 }
 0x1cb   :  { %v296_v50 = vmax.f32 %v292_v44, 0.0 }
 0x1cc   :  { %v295_v49 = vmax.f32 %v287_v46, 0.0 }
 0x1ce   :  { %4657 = vmatprep.mubr.msk.f32.mxu0 %vm117_vm0, %v295_v49  ;;  %v5757_v49 = vld [vmem:[%s6602_s1] sm:$0xff]  }
 0x1cf   :  { %4658 = vmatmul.mubr.msk.f32.vlgmr.msra.gmra.mrb[2].mxu0 %vm117_vm0, %v296_v50  ;;  %v5766_v50 = vld [vmem:[%s6602_s1 + $0x8] sm:$0xff]  }
 0x1d0   :  { %v4670_v53 = vpop.f32.mrb[2].mxu1  ;;  %5111 = vmatpush3.bf16.msra.mxu0 %v5108_v41 }
 0x1d1   :  { %v512_v54 = vadd.f32 %v4670_v53, %v4195_v52  ;;  %v506_v55 = vpop.f32.mrb[3].mxu1  ;;  %5113 = vmatprep.subr.bf16.mxu0 %v5112_v51  ;;  %v1189_v53 = vld [vmem:[%s6603_s13 + $0x8] sm:$0xff] }
 0x1d2   :  { %v507_v56 = vadd.f32 %v4195_v52, %v506_v55  ;;  %v1190_v55 = vld [vmem:[%s6603_s13 + $0x10] sm:$0xff] }
 0x1d3   :  { %v536_v57 = vmax.f32 %v512_v54, 0.0 }
 0x1d4   :  { %v535_v58 = vmax.f32 %v507_v56, 0.0  ;;  %v4673_v59 = vpop.f32.mrb[4].mxu1  ;;  %5115 = vmatpush3.bf16.msra.mxu0 %v5112_v51  ;;  %v5775_v51 = vld [vmem:[%s6602_s1 + $0x10] sm:$0xff]   ;;  %v1191_v56 = vld [vmem:[%s6603_s13 + $0x18] sm:$0xff] }
 0x1d5   :  { %v522_v60 = vadd.f32 %v4673_v59, %v4195_v52  ;;  %v516_v61 = vpop.f32.mrb[5].mxu1  ;;  %4711 = vmatprep.subr.bf16.mxu0 %v5460_v13  ;;  %v4219_v59 = vld [vmem:[%s6600_s4 + $0x5] ss:$0 sm:$0xff]  ;;  %s6609_s4 = sld [smem:[#allocation13_spill]] }
 0x1d6   :  { %v517_v62 = vadd.f32 %v4195_v52, %v516_v61  ;;  %4685 = vmatprep.mubr.msk.f32.mxu0 %vm117_vm0, %v535_v58  ;;  %v5794_v58 = vld [vmem:[%s6604_s9] sm:$0xff] }
 0x1d7   :  { %v538_v63 = vmax.f32 %v522_v60, 0.0  ;;  %4686 = vmatmul.mubr.msk.f32.vlgmr.msra.gmra.mrb[4].mxu0 %vm117_vm0, %v536_v57  ;;  %v5156_v57 = vpack.c.bf16 %v1191_v56, %v1190_v55 }
 0x1d8   :  { %v537_v0 = vmax.f32 %v517_v62, 0.0  ;;  %v4676_v1 = vpop.f32.mrb[6].mxu1 }
 0x1d9   :  { %v532_v2 = vadd.f32 %v4676_v1, %v4195_v52  ;;  %v526_v3 = vpop.f32.mrb[7].mxu1 }
 0x1da   :  { %v527_v4 = vadd.f32 %v4195_v52, %v526_v3  ;;  %4688 = vmatprep.mubr.msk.f32.mxu0 %vm117_vm0, %v537_v0  ;;  %v1188_v52 = vld [vmem:[%s6603_s13] sm:$0xff]  ;;  %s6608_s13 = sld [smem:[#allocation12_spill]] }
 0x1db   :  { %v540_v5 = vmax.f32 %v532_v2, 0.0  ;;  %4689 = vmatmul.mubr.msk.f32.gmra.mrb[6].mxu0 %vm117_vm0, %v538_v63  ;;  %v5152_v54 = vpack.c.bf16 %v1189_v53, %v1188_v52 }
 0x1dc   :  { %v539_v6 = vmax.f32 %v527_v4, 0.0 }
 0x1de   :  { %4691 = vmatprep.mubr.msk.f32.mxu0 %vm117_vm0, %v539_v6 }
 0x1df   :  { %4692 = vmatmul.mubr.msk.f32.gmra.mrb[8].mxu0 %vm117_vm0, %v540_v5 }
 0x1e0   :  { %4713 = vmatprep.mubr.msk.bf16.mxu0 %vm5461_vm1, %v5460_v13 }
 0x2a2   :  { %v4659_v15 = vpop.f32.mrb[2].mxu0 }
 0x2a3   :  { %v388_v16 = vadd.f32 %v4659_v15, %v4187_v14  ;;  %v382_v17 = vpop.f32.mrb[3].mxu0 }
 0x2a4   :  { %v383_v18 = vadd.f32 %v4187_v14, %v382_v17 }
 0x2a5   :  { %v392_v19 = vsub.f32 0.0, %v388_v16 }
 0x2a6   :  { %v391_v20 = vsub.f32 0.0, %v383_v18 }
 0x2a7   :  { %v395_v21 = vmul.f32 1.442695, %v392_v19 }
 0x2a8   :  { %v393_v22 = vmul.f32 1.442695, %v391_v20 }
 0x2a9   :  { %5319 = vpow2.f32 %v395_v21 }
 0x2aa   :  { %5321 = vpow2.f32 %v393_v22  ;;  %v4687_v24 = vpop.f32.mrb[4].mxu0 }
 0x2ab   :  { %v644_v25 = vadd.f32 %v4687_v24, %v4207_v23  ;;  %v638_v26 = vpop.f32.mrb[5].mxu0 }
 0x2ac   :  { %v639_v27 = vadd.f32 %v4207_v23, %v638_v26 }
 0x2ad   :  { %v668_v30 = vmax.f32 %v644_v25, 0.0 }
 0x2ae   :  { %v667_v28 = vmax.f32 %v639_v27, 0.0  ;;  %v4690_v29 = vpop.f32.mrb[6].mxu0 }
 0x2af   :  { %v654_v31 = vadd.f32 %v4690_v29, %v4207_v23  ;;  %v648_v32 = vpop.f32.mrb[7].mxu0 }
 0x2b0   :  { %v649_v33 = vadd.f32 %v4207_v23, %v648_v32  ;;  %4702 = vmatprep.mubr.msk.f32.mxu1 %vm117_vm0, %v667_v28 }
 0x2b1   :  { %4703 = vmatmul.mubr.msk.f32.vlgmr.msra.gmra.mrb[8].mxu1 %vm117_vm0, %v668_v30  ;;  %v670_v37 = vmax.f32 %v654_v31, 0.0 }
 0x2b2   :  { %v669_v34 = vmax.f32 %v649_v33, 0.0  ;;  %v4693_v35 = vpop.f32.mrb[8].mxu0 }
 0x2b3   :  { %v5320_v36 = vpop.eup %5319  ;;  %v664_v38 = vadd.f32 %v4693_v35, %v4207_v23  ;;  %v658_v39 = vpop.f32.mrb[9].mxu0 }
 0x2b4   :  { %v5322_v40 = vpop.eup %5321  ;;  %v398_v41 = vadd.f32 1.0, %v5320_v36  ;;  %v659_v42 = vadd.f32 %v4207_v23, %v658_v39  ;;  %4705 = vmatprep.mubr.msk.f32.mxu1 %vm117_vm0, %v669_v34 }
 0x2b5   :  { %v397_v43 = vadd.f32 1.0, %v5322_v40  ;;  %4706 = vmatmul.mubr.msk.f32.gmra.mrb[10].mxu1 %vm117_vm0, %v670_v37  ;;  %v672_v45 = vmax.f32 %v664_v38, 0.0 }
 0x2b6   :  { %5323 = vrcp.f32 %v398_v41  ;;  %v671_v44 = vmax.f32 %v659_v42, 0.0 }
 0x2b7   :  { %5325 = vrcp.f32 %v397_v43 }
 0x2b8   :  { %4708 = vmatprep.mubr.msk.f32.mxu1 %vm117_vm0, %v671_v44 }
 0x2b9   :  { %4709 = vmatmul.mubr.msk.f32.gmra.mrb[12].mxu1 %vm117_vm0, %v672_v45 }
 0x2ba   :  { %4737 = vmatprep.mubr.msk.f32.mxu1 %vm924_vm3, %v5794_v58 }
 0x2c0   :  { %v5748_v46 = vpop.eup %5323 }
 0x2c1   :  { %v5750_v47 = vpop.eup %5325 }
 0x2c2   :  { %v835_v48 = vpack.c.bf16 %v5748_v46, %v5750_v47 }
 0x2c4   :  { %4712 = vmatpush3.bf16.msra.mxu0 %v835_v48 }
 0x2c5   :  { %5153 = vmatprep.subr.bf16.mxu0 %v5152_v54 }
 0x2c7   :  { %4714 = vmatmul.mubr.msk.bf16.vlgmr.msra.gmra.mrb[12].mxu0 %vm851_vm2, %v5757_v49 }
 0x2c8   :  { %4717 = vmatprep.mubr.msk.bf16.mxu0 %vm5461_vm1, %v5460_v13  ;;  %5155 = vmatpush3.bf16.msra.mxu0 %v5152_v54 }
 0x2c9   :  { %5157 = vmatprep.subr.bf16.mxu0 %v5156_v57 }
 0x2cc   :  { %5159 = vmatpush3.bf16.msra.mxu0 %v5156_v57 }
 0x2cf   :  { %4718 = vmatmul.mubr.msk.bf16.gmra.mrb[16].mxu0 %vm851_vm2, %v5766_v50 }
 0x2d0   :  { %4721 = vmatprep.mubr.msk.bf16.mxu0 %vm5461_vm1, %v5460_v13 }
 0x2d7   :  { %4722 = vmatmul.mubr.msk.bf16.gmra.mrb[20].mxu0 %vm851_vm2, %v5775_v51 }
 0x384   :  { %v4704_v60 = vpop.f32.mrb[8].mxu1 }
 0x385   :  { %v776_v61 = vadd.f32 %v4704_v60, %v4219_v59  ;;  %v770_v62 = vpop.f32.mrb[9].mxu1 }
 0x386   :  { %v771_v63 = vadd.f32 %v4219_v59, %v770_v62 }
 0x387   :  { %v800_v0 = vsub.f32 0.0, %v776_v61 }
 0x388   :  { %v799_v1 = vsub.f32 0.0, %v771_v63  ;;  %v4707_v2 = vpop.f32.mrb[10].mxu1 }
 0x389   :  { %v807_v3 = vmul.f32 1.442695, %v800_v0  ;;  %v786_v4 = vadd.f32 %v4707_v2, %v4219_v59  ;;  %v780_v5 = vpop.f32.mrb[11].mxu1  ;;  %v103_v2 = vld [vmem:[%s6604_s9 + $0x8] sm:$0xff] }
 0x38a   :  { %v805_v6 = vmul.f32 1.442695, %v799_v1  ;;  %v781_v7 = vadd.f32 %v4219_v59, %v780_v5 }
 0x38b   :  { %5327 = vpow2.f32 %v807_v3  ;;  %v802_v8 = vsub.f32 0.0, %v786_v4  ;;  %v4234_v3 = vld [vmem:[%s6605_s8 + $0x20] sm:$0xff]  ;;  %v4235_v4 = vld [vmem:[%s6605_s8 + $0x28] sm:$0xff] }
 0x38c   :  { %5329 = vpow2.f32 %v805_v6  ;;  %v801_v9 = vsub.f32 0.0, %v781_v7  ;;  %v4710_v10 = vpop.f32.mrb[12].mxu1  ;;  %v5136_v5 = vpack.c.bf16 %v4235_v4, %v4234_v3  ;;  %v4236_v6 = vld [vmem:[%s6605_s8 + $0x30] sm:$0xff]  ;;  %v4237_v7 = vld [vmem:[%s6605_s8 + $0x38] sm:$0xff]  ;;  %v1453_v4 = vld [vmem:[%s6608_s13] sm:$0xff] }
 0x38d   :  { %v811_v11 = vmul.f32 1.442695, %v802_v8  ;;  %v796_v12 = vadd.f32 %v4710_v10, %v4219_v59  ;;  %v790_v14 = vpop.f32.mrb[13].mxu1  ;;  %v5140_v8 = vpack.c.bf16 %v4237_v7, %v4236_v6  ;;  %v1007_v10 = vld [vmem:[%s6605_s8 + $0x8] sm:$0xff] }
 0x38e   :  { %v809_v15 = vmul.f32 1.442695, %v801_v9  ;;  %v791_v16 = vadd.f32 %v4219_v59, %v790_v14  ;;  %v1006_v9 = vld [vmem:[%s6605_s8] sm:$0xff]  ;;  %v1458_v7 = vld [vmem:[%s6608_s13 + $0x28] sm:$0xff] }
 0x38f   :  { %5331 = vpow2.f32 %v811_v11  ;;  %v804_v17 = vsub.f32 0.0, %v796_v12  ;;  %v5144_v11 = vpack.c.bf16 %v1007_v10, %v1006_v9  ;;  %v1457_v10 = vld [vmem:[%s6608_s13 + $0x20] sm:$0xff] }
 0x390   :  { %5333 = vpow2.f32 %v809_v15  ;;  %v803_v18 = vsub.f32 0.0, %v791_v16 }
 0x391   :  { %v815_v19 = vmul.f32 1.442695, %v804_v17 }
 0x392   :  { %v813_v20 = vmul.f32 1.442695, %v803_v18 }
 0x393   :  { %5335 = vpow2.f32 %v815_v19  ;;  %v1008_v19 = vld [vmem:[%s6605_s8 + $0x10] sm:$0xff] }
 0x394   :  { %5337 = vpow2.f32 %v813_v20  ;;  %v1009_v20 = vld [vmem:[%s6605_s8 + $0x18] sm:$0xff] }
 0x395   :  { %v5328_v21 = vpop.eup %5327 }
 0x396   :  { %v5330_v22 = vpop.eup %5329  ;;  %v818_v23 = vadd.f32 1.0, %v5328_v21 }
 0x397   :  { %v817_v24 = vadd.f32 1.0, %v5330_v22 }
 0x398   :  { %5339 = vrcp.f32 %v818_v23  ;;  %v5148_v23 = vpack.c.bf16 %v1009_v20, %v1008_v19  ;;  %v1466_v20 = vld [vmem:[%s6608_s13 + $0x68] sm:$0xff] }
 0x399   :  { %v5332_v25 = vpop.eup %5331  ;;  %5341 = vrcp.f32 %v817_v24  ;;  %v1318_v24 = vld [vmem:[%s6606_s6] sm:$0xff] }
 0x39a   :  { %v5334_v26 = vpop.eup %5333  ;;  %v820_v27 = vadd.f32 1.0, %v5332_v25  ;;  %v5801_v28 = vpop.f32.mrb[12].mxu0  ;;  %v1319_v25 = vld [vmem:[%s6606_s6 + $0x8] sm:$0xff] }
 0x39b   :  { %v819_v29 = vadd.f32 1.0, %v5334_v26  ;;  %v4715_v30 = vpop.f32.mrb[13].mxu0  ;;  %v4243_v26 = vld [vmem:[%s6607_s5] ss:$0 sm:$0xff] }
 0x39c   :  { %5343 = vrcp.f32 %v820_v27  ;;  %v5803_v31 = vpop.f32.mrb[14].mxu0  ;;  %v5160_v27 = vpack.c.bf16 %v1319_v25, %v1318_v24  ;;  %v1320_v30 = vld [vmem:[%s6606_s6 + $0x10] sm:$0xff] }
 0x39d   :  { %v5336_v32 = vpop.eup %5335  ;;  %5345 = vrcp.f32 %v819_v29  ;;  %v4716_v33 = vpop.f32.mrb[15].mxu0  ;;  %v1467_v24 = vld [vmem:[%s6608_s13 + $0x70] sm:$0xff] }
 0x39e   :  { %v5338_v34 = vpop.eup %5337  ;;  %v822_v35 = vadd.f32 1.0, %v5336_v32  ;;  %v1321_v32 = vld [vmem:[%s6606_s6 + $0x18] sm:$0xff] }
 0x39f   :  { %v821_v36 = vadd.f32 1.0, %v5338_v34  ;;  %v5164_v33 = vpack.c.bf16 %v1321_v32, %v1320_v30 }
 0x3a1   :  { %5347 = vrcp.f32 %v821_v36 }
 0x3a2   :  { %v5805_v37 = vpop.eup %5339  ;;  %5349 = vrcp.f32 %v822_v35  ;;  %v5807_v38 = vpop.f32.mrb[16].mxu0  ;;  %v1323_v35 = vld [vmem:[%s6606_s6 + $0x28] sm:$0xff] }
 0x3a3   :  { %v5809_v39 = vpop.eup %5341  ;;  %v4719_v40 = vpop.f32.mrb[17].mxu0  ;;  %v919_v41 = vmul.f32 %v5805_v37, %v5803_v31 }
 0x3a4   :  { %4770 = vmatprep.mubr.msk.f32.mxu0 %vm117_vm0, %v5809_v39  ;;  %v5815_v42 = vpop.f32.mrb[18].mxu0  ;;  %v918_v43 = vmul.f32 %v5809_v39, %v5801_v28  ;;  %v1324_v40 = vld [vmem:[%s6606_s6 + $0x30] sm:$0xff] }
 0x3a5   :  { %4771 = vmatmul.mubr.msk.f32.vlgmr.msra.gmra.mrb[10].mxu0 %vm117_vm0, %v5805_v37  ;;  %v4720_v44 = vpop.f32.mrb[19].mxu0 }
 0x3a6   :  { %v5821_v45 = vpop.eup %5343  ;;  %v5124_v48 = vpack.c.bf16 %v919_v41, %v918_v43  ;;  %v1325_v41 = vld [vmem:[%s6606_s6 + $0x38] sm:$0xff] }
 0x3a7   :  { %v5823_v52 = vpop.eup %5345  ;;  %v921_v53 = vmul.f32 %v5821_v45, %v5815_v42  ;;  %v5172_v43 = vpack.c.bf16 %v1325_v41, %v1324_v40 }
 0x3a8   :  { %5125 = vmatprep.subr.bf16.mxu1 %v5124_v48  ;;  %4773 = vmatprep.mubr.msk.f32.mxu0 %vm117_vm0, %v5823_v52  ;;  %v920_v54 = vmul.f32 %v5823_v52, %v5807_v38 }
 0x3a9   :  { %5127 = vmatpush3.bf16.msra.mxu1 %v5124_v48  ;;  %4774 = vmatmul.mubr.msk.f32.gmra.mrb[24].mxu0 %vm117_vm0, %v5821_v45 }
 0x3aa   :  { %v5833_v55 = vpop.f32.mrb[20].mxu0  ;;  %v5128_v56 = vpack.c.bf16 %v921_v53, %v920_v54 }
 0x3ab   :  { %v5835_v57 = vpop.eup %5347  ;;  %v4723_v59 = vpop.f32.mrb[21].mxu0 }
 0x3ac   :  { %v5837_v60 = vpop.eup %5349  ;;  %5129 = vmatprep.subr.bf16.mxu1 %v5128_v56  ;;  %4776 = vmatprep.mubr.msk.f32.mxu0 %vm117_vm0, %v5835_v57  ;;  %v5841_v61 = vpop.f32.mrb[22].mxu0  ;;  %v922_v63 = vmul.f32 %v5835_v57, %v5833_v55 }
 0x3ad   :  { %5131 = vmatpush3.bf16.msra.mxu1 %v5128_v56  ;;  %4777 = vmatmul.mubr.msk.f32.gmra.mrb[26].mxu0 %vm117_vm0, %v5837_v60  ;;  %v4724_v62 = vpop.f32.mrb[23].mxu0  ;;  %v923_v0 = vmul.f32 %v5837_v60, %v5841_v61 }
 0x3ae   :  { %1563 = vmatprep.mubr.f32.mxu0 %v5460_v13 }
 0x3af   :  { %v5132_v1 = vpack.c.bf16 %v923_v0, %v922_v63 }
 0x3b1   :  { %5133 = vmatprep.subr.bf16.mxu1 %v5132_v1 }
 0x3b2   :  { %5135 = vmatpush3.bf16.msra.mxu1 %v5132_v1  ;;  %v1454_v1 = vld [vmem:[%s6608_s13 + $0x8] sm:$0xff] }
 0x3b3   :  { %5137 = vmatprep.subr.bf16.mxu1 %v5136_v5 }
 0x3b5   :  { %4738 = vmatmul.mubr.msk.f32.vlgmr.msra.gmra.mrb[14].mxu1 %vm924_vm3, %v103_v2  ;;  %v1456_v2 = vld [vmem:[%s6608_s13 + $0x18] sm:$0xff] }
 0x3b6   :  { %5139 = vmatpush3.bf16.msra.mxu1 %v5136_v5  ;;  %v5176_v3 = vpack.c.bf16 %v1456_v2, %v1454_v1  ;;  %v1455_v5 = vld [vmem:[%s6608_s13 + $0x10] sm:$0xff]  ;;  %v1471_v2 = vlaneseq }
 0x3b7   :  { %5141 = vmatprep.subr.bf16.mxu1 %v5140_v8  ;;  %v5178_v6 = vpack.c.bf16 %v1455_v5, %v1453_v4 }
 0x3b8   :  { %5177 = vmatprep.subr.bf16.mxu0 %v5176_v3  ;;  %v1472_v3 = vshrl.u32 %v1471_v2, 7 }
 0x3b9   :  { %5179 = vmatpush1.bf16.msra.mxu0 %v5178_v6 }
 0x3ba   :  { %5143 = vmatpush3.bf16.msra.mxu1 %v5140_v8  ;;  %v1460_v8 = vld [vmem:[%s6608_s13 + $0x38] sm:$0xff] }
 0x3bb   :  { %5145 = vmatprep.subr.bf16.mxu1 %v5144_v11  ;;  %v5180_v9 = vpack.c.bf16 %v1460_v8, %v1458_v7  ;;  %v1473_v8 = vsub.s32 0, %v1472_v3 }
 0x3bd   :  { %5181 = vmatprep.subr.bf16.mxu0 %v5180_v9  ;;  %v1469_v9 = vld [vmem:[%s6559_s14] sm:$0x3]  ;;  %s5462_s14 = smov 64  }
 0x478   :  { %v4772_v12 = vpop.f32.mrb[10].mxu0 }
 0x479   :  { %v1283_v14 = vpop.f32.mrb[11].mxu0  ;;  %v1289_v44 = vadd.f32 %v4772_v12, %v4243_v26  ;;  %v1462_v12 = vld [vmem:[%s6608_s13 + $0x48] sm:$0xff] }
 0x47a   :  { %v1284_v29 = vadd.f32 %v4243_v26, %v1283_v14 }
 0x47b   :  { %v1313_v48 = vmax.f32 %v1289_v44, 0.0 }
 0x47c   :  { %v4775_v15 = vpop.f32.mrb[24].mxu0  ;;  %v1312_v34 = vmax.f32 %v1284_v29, 0.0 }
 0x47d   :  { %v1293_v16 = vpop.f32.mrb[25].mxu0  ;;  %v1299_v53 = vadd.f32 %v4775_v15, %v4243_v26  ;;  %v1464_v15 = vld [vmem:[%s6608_s13 + $0x58] sm:$0xff] }
 0x47f   :  { %v1315_v59 = vmax.f32 %v1299_v53, 0.0 }
 0x480   :  { %v4778_v17 = vpop.f32.mrb[26].mxu0 }
 0x481   :  { %v1303_v18 = vpop.f32.mrb[27].mxu0  ;;  %v1309_v62 = vadd.f32 %v4778_v17, %v4243_v26  ;;  %v1463_v17 = vld [vmem:[%s6608_s13 + $0x50] sm:$0xff] }
 0x482   :  { %v1304_v56 = vadd.f32 %v4243_v26, %v1303_v18  ;;  %v5184_v18 = vpack.c.bf16 %v1464_v15, %v1462_v12 }
 0x483   :  { %v1317_v0 = vmax.f32 %v1309_v62, 0.0 }
 0x484   :  { %v1316_v63 = vmax.f32 %v1304_v56, 0.0 }
 0x488   :  { %v4739_v21 = vpop.f32.mrb[14].mxu1 }
 0x489   :  { %v997_v22 = vpop.f32.mrb[15].mxu1 }
 0x48a   :  { %4748 = vmatprep.mubr.msk.f32.mxu1 %vm117_vm0, %v997_v22 }
 0x48b   :  { %4749 = vmatmul.mubr.msk.f32.vlgmr.msra.gmra.mrb[16].mxu1 %vm117_vm0, %v4739_v21  ;;  %v1468_v21 = vld [vmem:[%s6608_s13 + $0x78] sm:$0xff] }
 0x48c   :  { %5147 = vmatpush3.bf16.msra.mxu1 %v5144_v11  ;;  %4759 = vmatprep.mubr.msk.f32.mxu1 %vm117_vm0, %v5750_v47  ;;  %v1322_v47 = vld [vmem:[%s6606_s6 + $0x20] sm:$0xff]  ;;  %v1459_v11 = vld [vmem:[%s6608_s13 + $0x30] sm:$0xff]  ;;  %v5188_v22 = vpack.c.bf16 %v1468_v21, %v1466_v20  ;;  %s6610_s6 = sld [smem:[#allocation14_spill]] }
 0x48d   :  { %5149 = vmatprep.subr.bf16.mxu1 %v5148_v23  ;;  %v5168_v36 = vpack.c.bf16 %v1323_v35, %v1322_v47  ;;  %v5182_v14 = vpack.c.bf16 %v1459_v11, %v1457_v10  ;;  %v1477_v10 = vsub.s32 1, %v1472_v3  ;;  %v6008_v11 = vrot.slane %v1469_v9, %v1473_v8 }
 0x48f   :  { %5183 = vmatpush1.bf16.msra.mxu0 %v5182_v14 }
 0x490   :  { %5151 = vmatpush3.bf16.msra.mxu1 %v5148_v23  ;;  %5185 = vmatprep.subr.bf16.mxu0 %v5184_v18  ;;  %v1465_v23 = vld [vmem:[%s6608_s13 + $0x60] sm:$0xff] }
 0x491   :  { %5161 = vmatprep.subr.bf16.mxu1 %v5160_v27  ;;  %v5190_v25 = vpack.c.bf16 %v1467_v24, %v1465_v23 }
 0x492   :  { %v4250_v35 = vld [vmem:[%s6610_s6] ss:$0 sm:$0xff] }
 0x493   :  { %4760 = vmatmul.mubr.msk.f32.vlgmr.msra.gmra.mrb[16].mxu1 %vm117_vm0, %v5748_v46  ;;  %v1294_v46 = vadd.f32 %v4243_v26, %v1293_v16  ;;  %v1461_v16 = vld [vmem:[%s6608_s13 + $0x40] sm:$0xff] }
 0x494   :  { %5163 = vmatpush3.bf16.msra.mxu1 %v5160_v27  ;;  %4795 = vmatprep.mubr.msk.f32.mxu1 %vm1333_vm4, %v1312_v34  ;;  %v5186_v19 = vpack.c.bf16 %v1463_v17, %v1461_v16  ;;  %v4242_v26 = vld [vmem:[%s6609_s4] ss:$0 sm:$0xff] }
 0x495   :  { %5165 = vmatprep.subr.bf16.mxu1 %v5164_v33  ;;  %v1314_v54 = vmax.f32 %v1294_v46, 0.0 }
 0x496   :  { %5187 = vmatpush1.bf16.msra.mxu0 %v5186_v19 }
 0x497   :  { %5189 = vmatprep.subr.bf16.mxu0 %v5188_v22 }
 0x498   :  { %5167 = vmatpush3.bf16.msra.mxu1 %v5164_v33 }
 0x499   :  { %5169 = vmatprep.subr.bf16.mxu1 %v5168_v36 }
 0x49a   :  { %5191 = vmatpush1.bf16.msra.mxu0 %v5190_v25 }
 0x49c   :  { %5171 = vmatpush3.bf16.msra.mxu1 %v5168_v36 }
 0x49d   :  { %5173 = vmatprep.subr.bf16.mxu1 %v5172_v43 }
 0x4a0   :  { %5175 = vmatpush3.bf16.msra.mxu1 %v5172_v43 }
 0x4a1   :  { %4804 = vmatprep.subr.bf16.mxu1 %v5460_v13 }
 0x4a3   :  { %4796 = vmatmul.mubr.msk.f32.vlgmr.msra.gmra.mrb[18].mxu1 %vm1333_vm4, %v1313_v48 }
 0x4a4   :  { %4798 = vmatprep.mubr.msk.f32.mxu1 %vm1333_vm4, %v1314_v54 }
 0x4a7   :  { %4799 = vmatmul.mubr.msk.f32.gmra.mrb[20].mxu1 %vm1333_vm4, %v1315_v59 }
 0x4a8   :  { %4801 = vmatprep.mubr.msk.f32.mxu1 %vm1333_vm4, %v1316_v63 }
 0x4ab   :  { %4802 = vmatmul.mubr.msk.f32.gmra.mrb[22].mxu1 %vm1333_vm4, %v1317_v0 }
 0x4ac   :  { %4806 = vmatprep.mubr.msk.bf16.mxu1 %vm5461_vm1, %v5460_v13 }
 0x566   :  { %v4761_v27 = vpop.f32.mrb[16].mxu1 }
 0x567   :  { %v1185_v29 = vadd.f32 %v4761_v27, %v4242_v26  ;;  %v1168_v30 = vpop.f32.mrb[17].mxu1 }
 0x568   :  { %v1184_v32 = vadd.f32 %v4242_v26, %v1168_v30 }
 0x569   :  { %v1187_v33 = vmax.f32 %v1185_v29, 0.0 }
 0x56a   :  { %v1186_v34 = vmax.f32 %v1184_v32, 0.0 }
 0x56c   :  { %v1672_v47 = vpack.c.bf16 %v1187_v33, %v1186_v34 }
 0x56e   :  { %4805 = vmatpush3.bf16.msra.mxu1 %v1672_v47 }
 0x56f   :  { %4847 = vmatprep.subr.bf16.mxu1 %v5460_v13 }
 0x571   :  { %4807 = vmatmul.mubr.msk.bf16.vlgmr.msra.gmra.mrb[24].mxu1 %vm851_vm2, %v5757_v49 }
 0x572   :  { %4810 = vmatprep.mubr.msk.bf16.mxu1 %vm5461_vm1, %v5460_v13 }
 0x576   :  { %v4797_v36 = vpop.f32.mrb[18].mxu1 }
 0x577   :  { %v1418_v40 = vpop.f32.mrb[19].mxu1  ;;  %v1424_v43 = vadd.f32 %v4797_v36, %v4250_v35 }
 0x578   :  { %v1419_v41 = vadd.f32 %v4250_v35, %v1418_v40 }
 0x579   :  { %4811 = vmatmul.mubr.msk.bf16.gmra.mrb[28].mxu1 %vm851_vm2, %v5766_v50  ;;  %v1448_v48 = vmax.f32 %v1424_v43, 0.0 }
 0x57a   :  { %v1447_v44 = vmax.f32 %v1419_v41, 0.0  ;;  %v4800_v46 = vpop.f32.mrb[20].mxu1  ;;  %4814 = vmatprep.mubr.msk.bf16.mxu1 %vm5461_vm1, %v5460_v13 }
 0x57b   :  { %v1428_v49 = vpop.f32.mrb[21].mxu1  ;;  %v1434_v50 = vadd.f32 %v4800_v46, %v4250_v35 }
 0x57c   :  { %4257 = vmatmul.mubr.msk.f32.vlgmr.msra.gmra.mrb[28].mxu0 %vm1333_vm4, %v1447_v44  ;;  %v1429_v53 = vadd.f32 %v4250_v35, %v1428_v49 }
 0x57d   :  { %1569 = vmatprep.mubr.f32.mxu0 %v5460_v13  ;;  %v1450_v62 = vmax.f32 %v1434_v50, 0.0 }
 0x57e   :  { %v4803_v54 = vpop.f32.mrb[22].mxu1  ;;  %v1449_v59 = vmax.f32 %v1429_v53, 0.0 }
 0x57f   :  { %v1438_v56 = vpop.f32.mrb[23].mxu1  ;;  %v1444_v0 = vadd.f32 %v4803_v54, %v4250_v35 }
 0x580   :  { %4258 = vmatmul.mubr.msk.f32.gmra.mrb[30].mxu0 %vm1333_vm4, %v1448_v48  ;;  %v1439_v63 = vadd.f32 %v4250_v35, %v1438_v56 }
 0x581   :  { %1575 = vmatprep.mubr.f32.mxu0 %v5460_v13  ;;  %4815 = vmatmul.mubr.msk.bf16.gmra.mrb[32].mxu1 %vm851_vm2, %v5775_v51  ;;  %v1452_v51 = vmax.f32 %v1444_v0, 0.0 }
 0x582   :  { %4849 = vmatprep.mubr.msk.bf16.mxu1 %vm5461_vm1, %v5460_v13  ;;  %v1451_v1 = vmax.f32 %v1439_v63, 0.0 }
 0x584   :  { %4259 = vmatmul.mubr.msk.f32.gmra.mrb[32].mxu0 %vm1333_vm4, %v1449_v59 }
 0x585   :  { %1581 = vmatprep.mubr.f32.mxu0 %v5460_v13 }
 0x588   :  { %4260 = vmatmul.mubr.msk.f32.gmra.mrb[34].mxu0 %vm1333_vm4, %v1450_v62 }
 0x589   :  { %1587 = vmatprep.mubr.f32.mxu0 %v5460_v13 }
 0x58c   :  { %4261 = vmatmul.mubr.msk.f32.gmra.mrb[36].mxu0 %vm1333_vm4, %v1451_v1 }
 0x58d   :  { %1593 = vmatprep.mubr.f32.mxu0 %v5460_v13 }
 0x590   :  { %4262 = vmatmul.mubr.msk.f32.gmra.mrb[38].mxu0 %vm1333_vm4, %v1452_v51 }
 0x591   :  { %4830 = vmatprep.mubr.msk.f32.mxu0 %vm924_vm3, %v5794_v58  ;;  %v6012_v58 = vrot.slane %v1469_v9, %v1477_v10 }
 0x644   :  { %v6001_v4 = vpop.f32.mrb[24].mxu1 }
 0x645   :  { %v4808_v5 = vpop.f32.mrb[25].mxu1 }
 0x646   :  { %v6003_v6 = vpop.f32.mrb[26].mxu1 }
 0x647   :  { %v4809_v7 = vpop.f32.mrb[27].mxu1 }
 0x64c   :  { %v6010_v12 = vpop.f32.mrb[28].mxu1 }
 0x64d   :  { %v4812_v14 = vpop.f32.mrb[29].mxu1 }
 0x64e   :  { %v6014_v15 = vpop.f32.mrb[30].mxu1 }
 0x64f   :  { %v1565_v16 = vpop.f32.mrb[28].mxu0  ;;  %v4813_v17 = vpop.f32.mrb[31].mxu1 }
 0x650   :  { %v1566_v18 = vadd.f32 %v1565_v16, %v6008_v11  ;;  %v1567_v19 = vpop.f32.mrb[29].mxu0 }
 0x651   :  { %v1568_v20 = vadd.f32 %v1567_v19, %v6012_v58 }
 0x652   :  { %v1600_v21 = vsub.f32 0.0, %v1566_v18 }
 0x653   :  { %v1601_v22 = vsub.f32 0.0, %v1568_v20  ;;  %v1571_v23 = vpop.f32.mrb[30].mxu0 }
 0x654   :  { %v1612_v24 = vmul.f32 1.442695, %v1600_v21  ;;  %v1572_v25 = vadd.f32 %v1571_v23, %v6008_v11  ;;  %v1573_v26 = vpop.f32.mrb[31].mxu0  ;;  %v6019_v27 = vpop.f32.mrb[32].mxu1 }
 0x655   :  { %v1614_v29 = vmul.f32 1.442695, %v1601_v22  ;;  %v1574_v30 = vadd.f32 %v1573_v26, %v6012_v58  ;;  %v4816_v32 = vpop.f32.mrb[33].mxu1 }
 0x656   :  { %5351 = vpow2.f32 %v1612_v24  ;;  %v1602_v33 = vsub.f32 0.0, %v1572_v25  ;;  %v6022_v34 = vpop.f32.mrb[34].mxu1 }
 0x657   :  { %5353 = vpow2.f32 %v1614_v29  ;;  %v1603_v47 = vsub.f32 0.0, %v1574_v30  ;;  %v1577_v35 = vpop.f32.mrb[32].mxu0  ;;  %v4817_v36 = vpop.f32.mrb[35].mxu1 }
 0x658   :  { %v1616_v40 = vmul.f32 1.442695, %v1602_v33  ;;  %v1578_v41 = vadd.f32 %v1577_v35, %v6008_v11  ;;  %v1579_v43 = vpop.f32.mrb[33].mxu0 }
 0x659   :  { %v1618_v44 = vmul.f32 1.442695, %v1603_v47  ;;  %v1580_v46 = vadd.f32 %v1579_v43, %v6012_v58 }
 0x65a   :  { %5355 = vpow2.f32 %v1616_v40  ;;  %v1604_v49 = vsub.f32 0.0, %v1578_v41 }
 0x65b   :  { %5357 = vpow2.f32 %v1618_v44  ;;  %v1605_v48 = vsub.f32 0.0, %v1580_v46  ;;  %v1583_v53 = vpop.f32.mrb[34].mxu0 }
 0x65c   :  { %v1620_v54 = vmul.f32 1.442695, %v1604_v49  ;;  %v1584_v56 = vadd.f32 %v1583_v53, %v6008_v11  ;;  %v1585_v50 = vpop.f32.mrb[35].mxu0 }
 0x65d   :  { %v1622_v59 = vmul.f32 1.442695, %v1605_v48  ;;  %v1586_v62 = vadd.f32 %v1585_v50, %v6012_v58 }
 0x65e   :  { %5359 = vpow2.f32 %v1620_v54  ;;  %v1606_v63 = vsub.f32 0.0, %v1584_v56 }
 0x65f   :  { %5361 = vpow2.f32 %v1622_v59  ;;  %v1607_v0 = vsub.f32 0.0, %v1586_v62  ;;  %v1589_v1 = vpop.f32.mrb[36].mxu0 }
 0x660   :  { %v5352_v51 = vpop.eup %5351  ;;  %v1624_v3 = vmul.f32 1.442695, %v1606_v63  ;;  %v1590_v5 = vadd.f32 %v1589_v1, %v6008_v11  ;;  %v1591_v7 = vpop.f32.mrb[37].mxu0 }
 0x661   :  { %v5354_v8 = vpop.eup %5353  ;;  %v1636_v9 = vadd.f32 1.0, %v5352_v51  ;;  %v1626_v10 = vmul.f32 1.442695, %v1607_v0  ;;  %v1592_v14 = vadd.f32 %v1591_v7, %v6012_v58 }
 0x662   :  { %v1637_v16 = vadd.f32 1.0, %v5354_v8  ;;  %5363 = vpow2.f32 %v1624_v3  ;;  %v1608_v17 = vsub.f32 0.0, %v1590_v5 }
 0x663   :  { %5365 = vrcp.f32 %v1636_v9  ;;  %v1609_v18 = vsub.f32 0.0, %v1592_v14  ;;  %v1595_v19 = vpop.f32.mrb[38].mxu0 }
 0x664   :  { %v5356_v20 = vpop.eup %5355  ;;  %5367 = vrcp.f32 %v1637_v16  ;;  %v1628_v21 = vmul.f32 1.442695, %v1608_v17  ;;  %v1596_v22 = vadd.f32 %v1595_v19, %v6008_v11  ;;  %v1597_v23 = vpop.f32.mrb[39].mxu0 }
 0x665   :  { %v5358_v24 = vpop.eup %5357  ;;  %v1638_v25 = vadd.f32 1.0, %v5356_v20  ;;  %5369 = vpow2.f32 %v1626_v10  ;;  %v1630_v26 = vmul.f32 1.442695, %v1609_v18  ;;  %v1598_v29 = vadd.f32 %v1597_v23, %v6012_v58 }
 0x666   :  { %v1639_v30 = vadd.f32 1.0, %v5358_v24  ;;  %5371 = vpow2.f32 %v1628_v21  ;;  %v1610_v32 = vsub.f32 0.0, %v1596_v22 }
 0x667   :  { %5373 = vrcp.f32 %v1638_v25  ;;  %v1611_v33 = vsub.f32 0.0, %v1598_v29 }
 0x668   :  { %v5360_v47 = vpop.eup %5359  ;;  %5375 = vrcp.f32 %v1639_v30  ;;  %v1632_v35 = vmul.f32 1.442695, %v1610_v32 }
 0x669   :  { %v5362_v36 = vpop.eup %5361  ;;  %v1640_v40 = vadd.f32 1.0, %v5360_v47  ;;  %5377 = vpow2.f32 %v1630_v26  ;;  %v1634_v41 = vmul.f32 1.442695, %v1611_v33 }
 0x66a   :  { %v1641_v11 = vadd.f32 1.0, %v5362_v36  ;;  %5379 = vpow2.f32 %v1632_v35 }
 0x66b   :  { %5381 = vrcp.f32 %v1640_v40 }
 0x66c   :  { %v5364_v43 = vpop.eup %5363  ;;  %5383 = vrcp.f32 %v1641_v11 }
 0x66d   :  { %v5366_v44 = vpop.eup %5365  ;;  %v1642_v46 = vadd.f32 1.0, %v5364_v43  ;;  %5385 = vpow2.f32 %v1634_v41 }
 0x66e   :  { %v5368_v58 = vpop.eup %5367  ;;  %1807 = vrot.lane.b32.xlu1 %v5366_v44, %s5462_s14  ;;  %1744 = vrot.lane.b32.xlu0 %v5366_v44, %s5463_s10  ;;  %v6035_v49 = vmul.f32 %v5366_v44, %v6001_v4 }
 0x66f   :  { %v5370_v48 = vpop.eup %5369  ;;  %5387 = vrcp.f32 %v1642_v46  ;;  %v6038_v53 = vmul.f32 %v5368_v58, %v6001_v4 }
 0x670   :  { %v5372_v54 = vpop.eup %5371  ;;  %v1643_v56 = vadd.f32 1.0, %v5370_v48 }
 0x671   :  { %v5374_v50 = vpop.eup %5373  ;;  %v1644_v59 = vadd.f32 1.0, %v5372_v54 }
 0x672   :  { %v5376_v62 = vpop.eup %5375  ;;  %5389 = vrcp.f32 %v1643_v56  ;;  %1809 = vrot.lane.b32.xlu1 %v5374_v50, %s5462_s14  ;;  %1831 = vrot.lane.b32.xlu0 %v5366_v44, %s5464_s29  ;;  %v6043_v63 = vmul.f32 %v5374_v50, %v6003_v6 }
 0x673   :  { %v5378_v0 = vpop.eup %5377  ;;  %5391 = vrcp.f32 %v1644_v59  ;;  %v6046_v1 = vmul.f32 %v5376_v62, %v6003_v6 }
 0x674   :  { %v5380_v51 = vpop.eup %5379  ;;  %v1645_v3 = vadd.f32 1.0, %v5378_v0 }
 0x675   :  { %v5382_v5 = vpop.eup %5381  ;;  %v1646_v7 = vadd.f32 1.0, %v5380_v51 }
 0x676   :  { %v5384_v8 = vpop.eup %5383  ;;  %5393 = vrcp.f32 %v1645_v3  ;;  %1833 = vrot.lane.b32.xlu1 %v5374_v50, %s5464_s29  ;;  %1906 = vrot.lane.b32.xlu0 %v5368_v58, %s5463_s10  ;;  %v6051_v9 = vmul.f32 %v5382_v5, %v6010_v12 }
 0x677   :  { %v5386_v10 = vpop.eup %5385  ;;  %5395 = vrcp.f32 %v1646_v7  ;;  %v6054_v14 = vmul.f32 %v5384_v8, %v6010_v12 }
 0x678   :  { %v1647_v16 = vadd.f32 1.0, %v5386_v10 }
 0x679   :  { %v5388_v17 = vpop.eup %5387 }
 0x67a   :  { %5397 = vrcp.f32 %v1647_v16  ;;  %1908 = vrot.lane.b32.xlu1 %v5376_v62, %s5463_s10  ;;  %1969 = vrot.lane.b32.xlu0 %v5368_v58, %s5462_s14  ;;  %v6059_v18 = vmul.f32 %v5388_v17, %v6014_v15 }
 0x67c   :  { %v5390_v19 = vpop.eup %5389 }
 0x67d   :  { %v5392_v20 = vpop.eup %5391  ;;  %v6062_v21 = vmul.f32 %v5390_v19, %v6014_v15 }
 0x67e   :  { %1971 = vrot.lane.b32.xlu1 %v5376_v62, %s5462_s14  ;;  %1993 = vrot.lane.b32.xlu0 %v5368_v58, %s5464_s29  ;;  %v6067_v22 = vmul.f32 %v5392_v20, %v6019_v27 }
 0x680   :  { %v5394_v23 = vpop.eup %5393 }
 0x681   :  { %v5396_v24 = vpop.eup %5395  ;;  %v6070_v25 = vmul.f32 %v5394_v23, %v6019_v27 }
 0x682   :  { %1995 = vrot.lane.b32.xlu1 %v5376_v62, %s5464_s29  ;;  %1746 = vrot.lane.b32.xlu0 %v5374_v50, %s5463_s10  ;;  %v6075_v26 = vmul.f32 %v5396_v24, %v6022_v34 }
 0x684   :  { %v5398_v29 = vpop.eup %5397 }
 0x685   :  { %v6078_v30 = vmul.f32 %v5398_v29, %v6022_v34 }
 0x686   :  { %1750 = vrot.lane.b32.xlu1 %v5388_v17, %s5463_s10  ;;  %1748 = vrot.lane.b32.xlu0 %v5382_v5, %s5463_s10 }
 0x68a   :  { %1813 = vrot.lane.b32.xlu1 %v5388_v17, %s5462_s14  ;;  %1811 = vrot.lane.b32.xlu0 %v5382_v5, %s5462_s14 }
 0x68e   :  { %1837 = vrot.lane.b32.xlu1 %v5388_v17, %s5464_s29  ;;  %1835 = vrot.lane.b32.xlu0 %v5382_v5, %s5464_s29 }
 0x692   :  { %1912 = vrot.lane.b32.xlu1 %v5390_v19, %s5463_s10  ;;  %1910 = vrot.lane.b32.xlu0 %v5384_v8, %s5463_s10 }
 0x696   :  { %1975 = vrot.lane.b32.xlu1 %v5390_v19, %s5462_s14  ;;  %1973 = vrot.lane.b32.xlu0 %v5384_v8, %s5462_s14 }
 0x69a   :  { %1999 = vrot.lane.b32.xlu1 %v5390_v19, %s5464_s29  ;;  %1997 = vrot.lane.b32.xlu0 %v5384_v8, %s5464_s29 }
 0x69e   :  { %1754 = vrot.lane.b32.xlu1 %v5396_v24, %s5463_s10  ;;  %1752 = vrot.lane.b32.xlu0 %v5392_v20, %s5463_s10 }
 0x6a2   :  { %1817 = vrot.lane.b32.xlu1 %v5396_v24, %s5462_s14  ;;  %1815 = vrot.lane.b32.xlu0 %v5392_v20, %s5462_s14 }
 0x6a6   :  { %1841 = vrot.lane.b32.xlu1 %v5396_v24, %s5464_s29  ;;  %1839 = vrot.lane.b32.xlu0 %v5392_v20, %s5464_s29 }
 0x6aa   :  { %1916 = vrot.lane.b32.xlu1 %v5398_v29, %s5463_s10  ;;  %1914 = vrot.lane.b32.xlu0 %v5394_v23, %s5463_s10 }
 0x6ae   :  { %1979 = vrot.lane.b32.xlu1 %v5398_v29, %s5462_s14  ;;  %1977 = vrot.lane.b32.xlu0 %v5394_v23, %s5462_s14 }
 0x6b2   :  { %2003 = vrot.lane.b32.xlu1 %v5398_v29, %s5464_s29  ;;  %2001 = vrot.lane.b32.xlu0 %v5394_v23, %s5464_s29 }
 0x6e0   :  { %v1808_v32 = vpop.permute.xlu1 %1807  ;;  %v1745_v33 = vpop.permute.xlu0 %1744 }
 0x6e1   :  { %v1762_v47 = vmul.f32 %v1745_v33, %v5801_v28  ;;  %v1825_v41 = vmul.f32 %v1808_v32, %v6001_v4 }
 0x6e3   :  { %v1768_v35 = vadd.f32 %v1762_v47, %v6035_v49 }
 0x6e4   :  { %v1810_v36 = vpop.permute.xlu1 %1809  ;;  %v1832_v40 = vpop.permute.xlu0 %1831 }
 0x6e5   :  { %v1849_v11 = vmul.f32 %v1832_v40, %v5801_v28  ;;  %v1774_v43 = vsel %vm117_vm0, %v1768_v35, 0.0  ;;  %v1826_v48 = vmul.f32 %v1810_v36, %v6003_v6 }
 0x6e6   :  { %1775 = vadd.xlane.f32.xlu0 %v1774_v43 }
 0x6e7   :  { %v1855_v44 = vadd.f32 %v1849_v11, %v1825_v41 }
 0x6e8   :  { %v1834_v46 = vpop.permute.xlu1 %1833  ;;  %v1907_v58 = vpop.permute.xlu0 %1906 }
 0x6e9   :  { %v1850_v54 = vmul.f32 %v1834_v46, %v5803_v31  ;;  %v1924_v56 = vmul.f32 %v1907_v58, %v5801_v28  ;;  %v1861_v49 = vsel %vm117_vm0, %v1855_v44, 0.0 }
 0x6ea   :  { %1862 = vadd.xlane.f32.xlu0 %v1861_v49 }
 0x6eb   :  { %v1930_v50 = vadd.f32 %v1924_v56, %v6038_v53  ;;  %v1856_v59 = vadd.f32 %v1850_v54, %v1826_v48 }
 0x6ec   :  { %v1909_v62 = vpop.permute.xlu1 %1908  ;;  %v1970_v0 = vpop.permute.xlu0 %1969 }
 0x6ed   :  { %v1925_v51 = vmul.f32 %v1909_v62, %v5803_v31  ;;  %v1936_v3 = vsel %vm117_vm0, %v1930_v50, 0.0  ;;  %v1864_v5 = vsel %vm117_vm0, %v1856_v59, 0.0  ;;  %v1987_v16 = vmul.f32 %v1970_v0, %v6001_v4 }
 0x6ee   :  { %1937 = vadd.xlane.f32.xlu1 %v1936_v3  ;;  %1865 = vadd.xlane.f32.xlu0 %v1864_v5 }
 0x6ef   :  { %v1931_v7 = vadd.f32 %v1925_v51, %v6046_v1 }
 0x6f0   :  { %v1972_v8 = vpop.permute.xlu1 %1971  ;;  %v1994_v10 = vpop.permute.xlu0 %1993 }
 0x6f1   :  { %v2011_v17 = vmul.f32 %v1994_v10, %v5801_v28  ;;  %v1939_v53 = vsel %vm117_vm0, %v1931_v7, 0.0  ;;  %v1988_v24 = vmul.f32 %v1972_v8, %v6003_v6 }
 0x6f2   :  { %1940 = vadd.xlane.f32.xlu0 %v1939_v53 }
 0x6f3   :  { %v2017_v19 = vadd.f32 %v2011_v17, %v1987_v16 }
 0x6f4   :  { %v1996_v20 = vpop.permute.xlu1 %1995  ;;  %v1747_v23 = vpop.permute.xlu0 %1746 }
 0x6f5   :  { %v2012_v29 = vmul.f32 %v1996_v20, %v5803_v31  ;;  %v1763_v32 = vmul.f32 %v1747_v23, %v5803_v31  ;;  %v2023_v1 = vsel %vm117_vm0, %v2017_v19, 0.0 }
 0x6f6   :  { %2024 = vadd.xlane.f32.xlu1 %v2023_v1 }
 0x6f7   :  { %v1769_v33 = vadd.f32 %v1763_v32, %v6043_v63  ;;  %v2018_v4 = vadd.f32 %v2012_v29, %v1988_v24 }
 0x6f8   :  { %v1751_v47 = vpop.permute.xlu1 %1750  ;;  %v1749_v28 = vpop.permute.xlu0 %1748 }
 0x6f9   :  { %v1765_v35 = vmul.f32 %v1751_v47, %v5815_v42  ;;  %v1764_v36 = vmul.f32 %v1749_v28, %v5807_v38  ;;  %v1777_v40 = vsel %vm117_vm0, %v1769_v33, 0.0  ;;  %v2026_v6 = vsel %vm117_vm0, %v2018_v4, 0.0 }
 0x6fa   :  { %1778 = vadd.xlane.f32.xlu1 %v1777_v40  ;;  %2027 = vadd.xlane.f32.xlu0 %v2026_v6 }
 0x6fb   :  { %v1770_v31 = vadd.f32 %v1764_v36, %v6051_v9  ;;  %v1771_v41 = vadd.f32 %v1765_v35, %v6059_v18 }
 0x6fc   :  { %v1814_v11 = vpop.permute.xlu1 %1813  ;;  %v1812_v43 = vpop.permute.xlu0 %1811 }
 0x6fd   :  { %v1780_v63 = vsel %vm117_vm0, %v1770_v31, 0.0  ;;  %v1783_v44 = vsel %vm117_vm0, %v1771_v41, 0.0  ;;  %v1828_v48 = vmul.f32 %v1814_v11, %v6014_v15  ;;  %v1827_v54 = vmul.f32 %v1812_v43, %v6010_v12 }
 0x6fe   :  { %1781 = vadd.xlane.f32.xlu1 %v1780_v63  ;;  %1784 = vadd.xlane.f32.xlu0 %v1783_v44 }
 0x700   :  { %v1838_v46 = vpop.permute.xlu1 %1837  ;;  %v1836_v58 = vpop.permute.xlu0 %1835 }
 0x701   :  { %v1852_v56 = vmul.f32 %v1838_v46, %v5815_v42  ;;  %v1851_v9 = vmul.f32 %v1836_v58, %v5807_v38 }
 0x703   :  { %v1857_v49 = vadd.f32 %v1851_v9, %v1827_v54  ;;  %v1858_v18 = vadd.f32 %v1852_v56, %v1828_v48 }
 0x704   :  { %v1913_v50 = vpop.permute.xlu1 %1912  ;;  %v1911_v59 = vpop.permute.xlu0 %1910 }
 0x705   :  { %v1927_v62 = vmul.f32 %v1913_v50, %v5815_v42  ;;  %v1926_v0 = vmul.f32 %v1911_v59, %v5807_v38  ;;  %v1867_v51 = vsel %vm117_vm0, %v1857_v49, 0.0  ;;  %v1870_v3 = vsel %vm117_vm0, %v1858_v18, 0.0 }
 0x706   :  { %1868 = vadd.xlane.f32.xlu1 %v1867_v51  ;;  %1871 = vadd.xlane.f32.xlu0 %v1870_v3 }
 0x707   :  { %v1932_v5 = vadd.f32 %v1926_v0, %v6054_v14  ;;  %v1933_v7 = vadd.f32 %v1927_v62, %v6062_v21 }
 0x708   :  { %v1976_v8 = vpop.permute.xlu1 %1975  ;;  %v1974_v10 = vpop.permute.xlu0 %1973 }
 0x709   :  { %v1942_v16 = vsel %vm117_vm0, %v1932_v5, 0.0  ;;  %v1945_v17 = vsel %vm117_vm0, %v1933_v7, 0.0  ;;  %v1990_v20 = vmul.f32 %v1976_v8, %v6014_v15  ;;  %v1989_v23 = vmul.f32 %v1974_v10, %v6010_v12 }
 0x70a   :  { %1943 = vadd.xlane.f32.xlu1 %v1942_v16  ;;  %1946 = vadd.xlane.f32.xlu0 %v1945_v17 }
 0x70c   :  { %v2000_v53 = vpop.permute.xlu1 %1999  ;;  %v1998_v19 = vpop.permute.xlu0 %1997 }
 0x70d   :  { %v2014_v24 = vmul.f32 %v2000_v53, %v5815_v42  ;;  %v2013_v14 = vmul.f32 %v1998_v19, %v5807_v38  ;;  %v1731_v53 = vand.u32 127, %v1471_v2 }
 0x70f   :  { %v2019_v29 = vadd.f32 %v2013_v14, %v1989_v23  ;;  %v2020_v21 = vadd.f32 %v2014_v24, %v1990_v20  ;;  %vm1879_vm5 = vcmp.eq.s32.totalorder %v1731_v53, 1  ;;  %vm1792_vm6 = vcmp.eq.s32.totalorder %v1731_v53, 0 }
 0x710   :  { %v1755_v32 = vpop.permute.xlu1 %1754  ;;  %v1753_v1 = vpop.permute.xlu0 %1752  ;;  %vm1954_vm7 = vcmp.eq.s32.totalorder %v1731_v53, 2  ;;  %vm2041_vm8 = vcmp.eq.s32.totalorder %v1731_v53, 3 }
 0x711   :  { %v1767_v33 = vmul.f32 %v1755_v32, %v5841_v61  ;;  %v1766_v4 = vmul.f32 %v1753_v1, %v5833_v55  ;;  %v2029_v47 = vsel %vm117_vm0, %v2019_v29, 0.0  ;;  %v2032_v28 = vsel %vm117_vm0, %v2020_v21, 0.0 }
 0x712   :  { %2030 = vadd.xlane.f32.xlu1 %v2029_v47  ;;  %2033 = vadd.xlane.f32.xlu0 %v2032_v28  ;;  %v4268_v20 = vsel %vm1954_vm7, 1.0, %v5460_v13  ;;  %v6181_v14 = vsel %vm2041_vm8, 1.0, %v5460_v13 }
 0x713   :  { %v1772_v12 = vadd.f32 %v1766_v4, %v6067_v22  ;;  %v1773_v42 = vadd.f32 %v1767_v33, %v6075_v26 }
 0x714   :  { %v1818_v15 = vpop.permute.xlu1 %1817  ;;  %v1816_v38 = vpop.permute.xlu0 %1815 }
 0x715   :  { %v1786_v35 = vsel %vm117_vm0, %v1772_v12, 0.0  ;;  %v1789_v36 = vsel %vm117_vm0, %v1773_v42, 0.0  ;;  %v1830_v31 = vmul.f32 %v1818_v15, %v6022_v34  ;;  %v1829_v41 = vmul.f32 %v1816_v38, %v6019_v27 }
 0x716   :  { %1787 = vadd.xlane.f32.xlu1 %v1786_v35  ;;  %1790 = vadd.xlane.f32.xlu0 %v1789_v36 }
 0x718   :  { %v1842_v40 = vpop.permute.xlu1 %1841  ;;  %v1840_v6 = vpop.permute.xlu0 %1839 }
 0x719   :  { %v1854_v11 = vmul.f32 %v1842_v40, %v5841_v61  ;;  %v1853_v22 = vmul.f32 %v1840_v6, %v5833_v55 }
 0x71b   :  { %v1859_v43 = vadd.f32 %v1853_v22, %v1829_v41  ;;  %v1860_v26 = vadd.f32 %v1854_v11, %v1830_v31 }
 0x71c   :  { %v1917_v63 = vpop.permute.xlu1 %1916  ;;  %v1915_v44 = vpop.permute.xlu0 %1914 }
 0x71d   :  { %v1929_v46 = vmul.f32 %v1917_v63, %v5841_v61  ;;  %v1928_v58 = vmul.f32 %v1915_v44, %v5833_v55  ;;  %v1873_v48 = vsel %vm117_vm0, %v1859_v43, 0.0  ;;  %v1876_v54 = vsel %vm117_vm0, %v1860_v26, 0.0 }
 0x71e   :  { %1874 = vadd.xlane.f32.xlu1 %v1873_v48  ;;  %1877 = vadd.xlane.f32.xlu0 %v1876_v54 }
 0x71f   :  { %v1934_v56 = vadd.f32 %v1928_v58, %v6070_v25  ;;  %v1935_v9 = vadd.f32 %v1929_v46, %v6078_v30 }
 0x720   :  { %v1980_v49 = vpop.permute.xlu1 %1979  ;;  %v1978_v18 = vpop.permute.xlu0 %1977 }
 0x721   :  { %v1948_v50 = vsel %vm117_vm0, %v1934_v56, 0.0  ;;  %v1951_v59 = vsel %vm117_vm0, %v1935_v9, 0.0  ;;  %v1992_v51 = vmul.f32 %v1980_v49, %v6022_v34  ;;  %v1991_v3 = vmul.f32 %v1978_v18, %v6019_v27 }
 0x722   :  { %1949 = vadd.xlane.f32.xlu1 %v1948_v50  ;;  %1952 = vadd.xlane.f32.xlu0 %v1951_v59  ;;  %v4266_v27 = vsel %vm1792_vm6, 1.0, %v5460_v13 }
 0x724   :  { %v2004_v62 = vpop.permute.xlu1 %2003  ;;  %v2002_v0 = vpop.permute.xlu0 %2001 }
 0x725   :  { %v2016_v5 = vmul.f32 %v2004_v62, %v5841_v61  ;;  %v2015_v25 = vmul.f32 %v2002_v0, %v5833_v55  ;;  %v4267_v61 = vsel %vm1879_vm5, 1.0, %v5460_v13 }
 0x727   :  { %v2021_v7 = vadd.f32 %v2015_v25, %v1991_v3  ;;  %v2022_v30 = vadd.f32 %v2016_v5, %v1992_v51 }
 0x729   :  { %v2035_v8 = vsel %vm117_vm0, %v2021_v7, 0.0  ;;  %v2038_v10 = vsel %vm117_vm0, %v2022_v30, 0.0 }
 0x72a   :  { %2036 = vadd.xlane.f32.xlu1 %v2035_v8  ;;  %2039 = vadd.xlane.f32.xlu0 %v2038_v10 }
 0x773   :  { %v1776_v16 = vpop.xlane.xlu0 %1775 }
 0x774   :  { %v1795_v2 = vmul.f32 %v4266_v27, %v1776_v16 }
 0x777   :  { %v1863_v17 = vpop.xlane.xlu0 %1862 }
 0x778   :  { %v1882_v24 = vmul.f32 %v4267_v61, %v1863_v17 }
 0x77a   :  { %v1888_v4 = vadd.f32 %v1882_v24, %v1795_v2 }
 0x77b   :  { %v1938_v19 = vpop.xlane.xlu1 %1937  ;;  %v1866_v34 = vpop.xlane.xlu0 %1865 }
 0x77c   :  { %v1957_v21 = vmul.f32 %v4268_v20, %v1938_v19  ;;  %v1883_v32 = vmul.f32 %v4267_v61, %v1866_v34 }
 0x77e   :  { %v1963_v42 = vadd.f32 %v1957_v21, %v1888_v4 }
 0x77f   :  { %v1941_v23 = vpop.xlane.xlu0 %1940 }
 0x780   :  { %v1958_v47 = vmul.f32 %v4268_v20, %v1941_v23 }
 0x783   :  { %v2025_v55 = vpop.xlane.xlu1 %2024 }
 0x784   :  { %v2044_v28 = vmul.f32 %v6181_v14, %v2025_v55 }
 0x786   :  { %v2050_v35 = vadd.f32 %v2044_v28, %v1963_v42 }
 0x787   :  { %v1779_v29 = vpop.xlane.xlu1 %1778  ;;  %v2028_v33 = vpop.xlane.xlu0 %2027 }
 0x788   :  { %v1796_v1 = vmul.f32 %v4266_v27, %v1779_v29  ;;  %v2045_v38 = vmul.f32 %v6181_v14, %v2028_v33 }
 0x78a   :  { %v1889_v12 = vadd.f32 %v1883_v32, %v1796_v1 }
 0x78b   :  { %v1782_v40 = vpop.xlane.xlu1 %1781  ;;  %v1785_v6 = vpop.xlane.xlu0 %1784 }
 0x78c   :  { %v1964_v15 = vadd.f32 %v1958_v47, %v1889_v12  ;;  %v1797_v44 = vmul.f32 %v4266_v27, %v1782_v40  ;;  %v1798_v46 = vmul.f32 %v4266_v27, %v1785_v6  ;;  %v6234_v40 = vld [vmem:[%s6560_s3 + $0x8] sm:$0xff]  }
 0x78d   :  { %v6239_v6 = vld [vmem:[%s6602_s1 + $0x8] sm:$0xff]  }
 0x78e   :  { %v2051_v36 = vadd.f32 %v2045_v38, %v1964_v15  ;;  %v2281_v38 = vld [vmem:[%s6562_s17] sm:$0xf] }
 0x790   :  { %v5192_v31 = vpack.c.bf16 %v2051_v36, %v2050_v35  ;;  %v6214_v35 = vld [vmem:[%s6560_s3] sm:$0xff]  }
 0x791   :  { %v6220_v36 = vld [vmem:[%s6602_s1] sm:$0xff]  }
 0x792   :  { %5193 = vmatprep.subr.bf16.mxu0 %v5192_v31 }
 0x793   :  { %v1869_v41 = vpop.xlane.xlu1 %1868  ;;  %5195 = vmatpush3.bf16.msra.mxu0 %v5192_v31  ;;  %v1872_v11 = vpop.xlane.xlu0 %1871  ;;  %v6252_v31 = vld [vmem:[%s6560_s3 + $0x10] sm:$0xff]  }
 0x794   :  { %v1884_v26 = vmul.f32 %v4267_v61, %v1869_v41  ;;  %v1885_v63 = vmul.f32 %v4267_v61, %v1872_v11  ;;  %v6257_v41 = vld [vmem:[%s6602_s1 + $0x10] sm:$0xff]   ;;  %v2277_v11 = vld [vmem:[%s6563_s16] sm:$0xff] }
 0x796   :  { %v1890_v54 = vadd.f32 %v1884_v26, %v1797_v44  ;;  %v1891_v56 = vadd.f32 %v1885_v63, %v1798_v46  ;;  %v2638_v26 = vld [vmem:[%s6564_s18] sm:$0xff]  ;;  %v2639_v63 = vld [vmem:[%s6564_s18 + $0x8] sm:$0xff]  ;;  %v2279_v46 = vld [vmem:[%s6563_s16 + $0x10] sm:$0xff] }
 0x797   :  { %v1944_v22 = vpop.xlane.xlu1 %1943  ;;  %v1947_v43 = vpop.xlane.xlu0 %1946  ;;  %v5212_v44 = vpack.c.bf16 %v2639_v63, %v2638_v26 }
 0x798   :  { %v1959_v58 = vmul.f32 %v4268_v20, %v1944_v22  ;;  %v1960_v48 = vmul.f32 %v4268_v20, %v1947_v43  ;;  %v2278_v22 = vld [vmem:[%s6563_s16 + $0x8] sm:$0xff] }
 0x799   :  { %v5204_v43 = vpack.c.bf16 %v2278_v22, %v2277_v11  ;;  %v2768_v11 = vld [vmem:[%s6566_s19 + $0x8] sm:$0xff] }
 0x79a   :  { %v1965_v18 = vadd.f32 %v1959_v58, %v1890_v54  ;;  %v1966_v50 = vadd.f32 %v1960_v48, %v1891_v56  ;;  %v2280_v58 = vld [vmem:[%s6563_s16 + $0x18] sm:$0xff] }
 0x79f   :  { %v2031_v9 = vpop.xlane.xlu1 %2030  ;;  %v2034_v49 = vpop.xlane.xlu0 %2033 }
 0x7a0   :  { %v2046_v59 = vmul.f32 %v6181_v14, %v2031_v9  ;;  %v2047_v62 = vmul.f32 %v6181_v14, %v2034_v49  ;;  %v5208_v9 = vpack.c.bf16 %v2280_v58, %v2279_v46 }
 0x7a2   :  { %v2052_v0 = vadd.f32 %v2046_v59, %v1965_v18  ;;  %v2053_v51 = vadd.f32 %v2047_v62, %v1966_v50 }
 0x7a3   :  { %v1788_v5 = vpop.xlane.xlu1 %1787  ;;  %v1791_v25 = vpop.xlane.xlu0 %1790 }
 0x7a4   :  { %v5196_v3 = vpack.c.bf16 %v2053_v51, %v2052_v0  ;;  %v1799_v53 = vmul.f32 %v4266_v27, %v1788_v5  ;;  %v1800_v19 = vmul.f32 %v4266_v27, %v1791_v25  ;;  %v4270_v27 = vld [vmem:[%s6561_s15] ss:$0 sm:$0xff]  ;;  %v4295_v0 = vld [vmem:[%s6562_s17 + $0x4] sm:$0xf] }
 0x7a6   :  { %5197 = vmatprep.subr.bf16.mxu0 %v5196_v3 }
 0x7a7   :  { %5199 = vmatpush3.bf16.msra.mxu0 %v5196_v3 }
 0x7ab   :  { %v1875_v7 = vpop.xlane.xlu1 %1874  ;;  %v1878_v30 = vpop.xlane.xlu0 %1877 }
 0x7ac   :  { %v1886_v16 = vmul.f32 %v4267_v61, %v1875_v7  ;;  %v1887_v17 = vmul.f32 %v4267_v61, %v1878_v30  ;;  %v6193_v61 = vld [vmem:[%s6604_s9 + $0x8] sm:$0xff] }
 0x7ae   :  { %v1892_v23 = vadd.f32 %v1886_v16, %v1799_v53  ;;  %v1893_v24 = vadd.f32 %v1887_v17, %v1800_v19 }
 0x7af   :  { %v1950_v8 = vpop.xlane.xlu1 %1949  ;;  %v1953_v10 = vpop.xlane.xlu0 %1952 }
 0x7b0   :  { %v1961_v34 = vmul.f32 %v4268_v20, %v1950_v8  ;;  %v1962_v55 = vmul.f32 %v4268_v20, %v1953_v10 }
 0x7b2   :  { %v1967_v21 = vadd.f32 %v1961_v34, %v1892_v23  ;;  %v1968_v32 = vadd.f32 %v1962_v55, %v1893_v24 }
 0x7b7   :  { %v2037_v29 = vpop.xlane.xlu1 %2036  ;;  %v2040_v2 = vpop.xlane.xlu0 %2039 }
 0x7b8   :  { %v2048_v1 = vmul.f32 %v6181_v14, %v2037_v29  ;;  %v2049_v33 = vmul.f32 %v6181_v14, %v2040_v2 }
 0x7ba   :  { %v2054_v4 = vadd.f32 %v2048_v1, %v1967_v21  ;;  %v2055_v47 = vadd.f32 %v2049_v33, %v1968_v32 }
 0x7bc   :  { %v5200_v28 = vpack.c.bf16 %v2055_v47, %v2054_v4 }
 0x7be   :  { %5201 = vmatprep.subr.bf16.mxu0 %v5200_v28 }
 0x7bf   :  { %5203 = vmatpush3.bf16.msra.mxu0 %v5200_v28 }
 0x7c0   :  { %4833 = vmatprep.subr.bf16.mxu0 %v5460_v13 }
 0x7c2   :  { %4831 = vmatmul.mubr.msk.f32.vlgmr.msra.gmra.mrb[40].mxu0 %vm924_vm3, %v6193_v61 }
 0x7c3   :  { %4835 = vmatprep.mubr.msk.bf16.mxu0 %vm5461_vm1, %v5460_v13 }
 0x895   :  { %v4832_v20 = vpop.f32.mrb[40].mxu0 }
 0x896   :  { %v6202_v14 = vadd.f32 %v4832_v20, %v4270_v27  ;;  %v2129_v12 = vpop.f32.mrb[41].mxu0 }
 0x897   :  { %v6204_v42 = vadd.f32 %v4270_v27, %v2129_v12 }
 0x899   :  { %v2138_v15 = vpack.c.bf16 %v6202_v14, %v6204_v42 }
 0x89b   :  { %4834 = vmatpush3.bf16.msra.mxu0 %v2138_v15  ;;  %4848 = vmatpush3.bf16.msra.mxu1 %v2138_v15 }
 0x89c   :  { %4861 = vmatprep.subr.msk.mxu0 %vm2301_vm9, %v2281_v38  ;;  %5213 = vmatprep.subr.bf16.mxu1 %v5212_v44 }
 0x89e   :  { %4836 = vmatmul.mubr.msk.bf16.vlgmr.msra.gmra.mrb[44].mxu0 %vm851_vm2, %v6220_v36  ;;  %4850 = vmatmul.mubr.msk.bf16.vlgmr.msra.gmra.mrb[36].mxu1 %vm851_vm2, %v6214_v35 }
 0x89f   :  { %4839 = vmatprep.mubr.msk.bf16.mxu0 %vm5461_vm1, %v5460_v13  ;;  %4853 = vmatprep.mubr.msk.bf16.mxu1 %vm5461_vm1, %v5460_v13 }
 0x8a0   :  { %4862 = vmatpush3.msk.msra.mxu0 %vm2301_vm9, %v2281_v38  ;;  %5215 = vmatpush3.bf16.msra.mxu1 %v5212_v44  ;;  %v2767_v38 = vld [vmem:[%s6566_s19] sm:$0xff] }
 0x8a1   :  { %5205 = vmatprep.subr.bf16.mxu0 %v5204_v43  ;;  %v5216_v22 = vpack.c.bf16 %v2768_v11, %v2767_v38 }
 0x8a3   :  { %5217 = vmatprep.subr.bf16.mxu1 %v5216_v22 }
 0x8a6   :  { %4840 = vmatmul.mubr.msk.bf16.gmra.mrb[48].mxu0 %vm851_vm2, %v6239_v6  ;;  %4854 = vmatmul.mubr.msk.bf16.gmra.mrb[40].mxu1 %vm851_vm2, %v6234_v40 }
 0x8a7   :  { %4843 = vmatprep.mubr.msk.bf16.mxu0 %vm5461_vm1, %v5460_v13  ;;  %4857 = vmatprep.mubr.msk.bf16.mxu1 %vm5461_vm1, %v5460_v13 }
 0x8ae   :  { %4844 = vmatmul.mubr.msk.bf16.gmra.mrb[52].mxu0 %vm851_vm2, %v6257_v41  ;;  %4858 = vmatmul.mubr.msk.bf16.gmra.mrb[44].mxu1 %vm851_vm2, %v6252_v31 }
 0x971   :  { %v2173_v48 = vpop.f32.mrb[44].mxu0  ;;  %v2254_v54 = vpop.f32.mrb[36].mxu1 }
 0x972   :  { %v4837_v56 = vpop.f32.mrb[45].mxu0  ;;  %4863 = vmatprep.mubr.msk.f32.mxu0 %vm2282_vm10, %v2173_v48  ;;  %v4851_v49 = vpop.f32.mrb[37].mxu1 }
 0x973   :  { %v2176_v18 = vpop.f32.mrb[46].mxu0  ;;  %v2257_v50 = vpop.f32.mrb[38].mxu1 }
 0x974   :  { %v4838_v59 = vpop.f32.mrb[47].mxu0  ;;  %4864 = vmatmul.mubr.msk.f32.vlgmr.msra.gmra.mrb[42].mxu0 %vm2282_vm10, %v2176_v18  ;;  %v4852_v62 = vpop.f32.mrb[39].mxu1 }
 0x975   :  { %5207 = vmatpush3.bf16.msra.mxu0 %v5204_v43  ;;  %v4305_v43 = vld [vmem:[%s6565_s20 + $0x1] ss:$0 sm:$0xff] }
 0x976   :  { %5209 = vmatprep.subr.bf16.mxu0 %v5208_v9 }
 0x979   :  { %v2181_v51 = vpop.f32.mrb[48].mxu0  ;;  %5211 = vmatpush3.bf16.msra.mxu0 %v5208_v9  ;;  %v2262_v3 = vpop.f32.mrb[40].mxu1 }
 0x97a   :  { %v4841_v5 = vpop.f32.mrb[49].mxu0  ;;  %4866 = vmatprep.mubr.msk.f32.mxu0 %vm2282_vm10, %v2181_v51  ;;  %4889 = vmatprep.subr.msk.mxu0 %vm2301_vm9, %v4295_v0  ;;  %v4855_v25 = vpop.f32.mrb[41].mxu1 }
 0x97b   :  { %v2184_v7 = vpop.f32.mrb[50].mxu0  ;;  %v2265_v30 = vpop.f32.mrb[42].mxu1  ;;  %v5459_v25 = vld [vmem:[%s6604_s9] sm:$0xff] }
 0x97c   :  { %v4842_v8 = vpop.f32.mrb[51].mxu0  ;;  %4867 = vmatmul.mubr.msk.f32.gmra.mrb[56].mxu0 %vm2282_vm10, %v2184_v7  ;;  %v4856_v10 = vpop.f32.mrb[43].mxu1  ;;  %v4322_v7 = vld [vmem:[%s6563_s16 + $0x20] sm:$0xff] }
 0x97d   :  { %v4324_v8 = vld [vmem:[%s6563_s16 + $0x30] sm:$0xff] }
 0x981   :  { %v2189_v16 = vpop.f32.mrb[52].mxu0  ;;  %v2270_v17 = vpop.f32.mrb[44].mxu1 }
 0x982   :  { %v4845_v53 = vpop.f32.mrb[53].mxu0  ;;  %4869 = vmatprep.mubr.msk.f32.mxu0 %vm2282_vm10, %v2189_v16  ;;  %v4859_v19 = vpop.f32.mrb[45].mxu1  ;;  %v4325_v16 = vld [vmem:[%s6563_s16 + $0x38] sm:$0xff] }
 0x983   :  { %v2192_v34 = vpop.f32.mrb[54].mxu0  ;;  %v2273_v55 = vpop.f32.mrb[46].mxu1  ;;  %v4312_v53 = vld [vmem:[%s6567_s21] ss:$0 sm:$0xff] }
 0x984   :  { %4870 = vmatmul.mubr.msk.f32.gmra.mrb[58].mxu0 %vm2282_vm10, %v2192_v34  ;;  %v4846_v23 = vpop.f32.mrb[55].mxu0  ;;  %v4860_v24 = vpop.f32.mrb[47].mxu1 }
 0x985   :  { %4880 = vmatprep.mubr.msk.f32.mxu0 %vm117_vm0, %v5809_v39 }
 0x988   :  { %4881 = vmatmul.mubr.msk.f32.vlgmr.msra.gmra.mrb[42].mxu0 %vm117_vm0, %v5805_v37  ;;  %v4303_v37 = vld [vmem:[%s6565_s20] ss:$0 sm:$0xff] }
 0x989   :  { %4883 = vmatprep.mubr.msk.f32.mxu0 %vm117_vm0, %v5823_v52  ;;  %4890 = vmatpush3.msk.msra.mxu0 %vm2301_vm9, %v4295_v0 }
 0x98c   :  { %4884 = vmatmul.mubr.msk.f32.gmra.mrb[56].mxu0 %vm117_vm0, %v5821_v45 }
 0x98d   :  { %4886 = vmatprep.mubr.msk.f32.mxu0 %vm117_vm0, %v5835_v57 }
 0x990   :  { %4887 = vmatmul.mubr.msk.f32.gmra.mrb[58].mxu0 %vm117_vm0, %v5837_v60 }
 0x991   :  { %4891 = vmatprep.mubr.msk.f32.mxu0 %vm2282_vm10, %v2254_v54 }
 0x994   :  { %4892 = vmatmul.mubr.msk.f32.vlgmr.msra.gmra.mrb[42].mxu0 %vm2282_vm10, %v2257_v50 }
 0x995   :  { %4894 = vmatprep.mubr.msk.f32.mxu0 %vm2282_vm10, %v2262_v3 }
 0x998   :  { %4895 = vmatmul.mubr.msk.f32.gmra.mrb[56].mxu0 %vm2282_vm10, %v2265_v30  ;;  %v4323_v30 = vld [vmem:[%s6563_s16 + $0x28] sm:$0xff] }
 0x999   :  { %4897 = vmatprep.mubr.msk.f32.mxu0 %vm2282_vm10, %v2270_v17  ;;  %v5232_v10 = vpack.c.bf16 %v4323_v30, %v4322_v7  ;;  %v5236_v17 = vpack.c.bf16 %v4325_v16, %v4324_v8  ;;  %v4334_v30 = vld [vmem:[%s6564_s18 + $0x18] sm:$0xff] }
 0x99b   :  { %5233 = vmatprep.subr.bf16.mxu0 %v5232_v10 }
 0x99c   :  { %4898 = vmatmul.mubr.msk.f32.gmra.mrb[58].mxu0 %vm2282_vm10, %v2273_v55 }
 0x99d   :  { %5235 = vmatpush3.bf16.msra.mxu0 %v5232_v10 }
 0x99e   :  { %5237 = vmatprep.subr.bf16.mxu0 %v5236_v17 }
 0x9a1   :  { %5239 = vmatpush3.bf16.msra.mxu0 %v5236_v17 }
 0xa67   :  { %v4893_v39 = vpop.f32.mrb[42].mxu0 }
 0xa68   :  { %v2627_v45 = vadd.f32 %v4893_v39, %v4303_v37  ;;  %v2584_v52 = vpop.f32.mrb[43].mxu0 }
 0xa69   :  { %v2626_v57 = vadd.f32 %v4303_v37, %v2584_v52 }
 0xa6a   :  { %v2633_v2 = vmax.f32 %v2627_v45, 0.0 }
 0xa6b   :  { %v2632_v60 = vmax.f32 %v2626_v57, 0.0  ;;  %v4896_v29 = vpop.f32.mrb[56].mxu0 }
 0xa6c   :  { %v2629_v21 = vadd.f32 %v4896_v29, %v4303_v37  ;;  %v2594_v32 = vpop.f32.mrb[57].mxu0 }
 0xa6d   :  { %v2628_v1 = vadd.f32 %v4303_v37, %v2594_v32  ;;  %4904 = vmatprep.mubr.msk.f32.mxu1 %vm851_vm2, %v2632_v60 }
 0xa6e   :  { %4905 = vmatmul.mubr.msk.f32.vlgmr.msra.gmra.mrb[48].mxu1 %vm851_vm2, %v2633_v2  ;;  %v2635_v47 = vmax.f32 %v2629_v21, 0.0 }
 0xa6f   :  { %v2634_v33 = vmax.f32 %v2628_v1, 0.0  ;;  %v4899_v4 = vpop.f32.mrb[58].mxu0  ;;  %5219 = vmatpush3.bf16.msra.mxu1 %v5216_v22 }
 0xa70   :  { %v2631_v28 = vadd.f32 %v4899_v4, %v4303_v37  ;;  %v2604_v27 = vpop.f32.mrb[59].mxu0 }
 0xa71   :  { %v2630_v20 = vadd.f32 %v4303_v37, %v2604_v27  ;;  %4907 = vmatprep.mubr.msk.f32.mxu1 %vm851_vm2, %v2634_v33 }
 0xa72   :  { %4908 = vmatmul.mubr.msk.f32.gmra.mrb[50].mxu1 %vm851_vm2, %v2635_v47  ;;  %v2637_v15 = vmax.f32 %v2631_v28, 0.0 }
 0xa73   :  { %v2636_v12 = vmax.f32 %v2630_v20, 0.0 }
 0xa75   :  { %4910 = vmatprep.mubr.msk.f32.mxu1 %vm851_vm2, %v2636_v12 }
 0xa76   :  { %4911 = vmatmul.mubr.msk.f32.gmra.mrb[52].mxu1 %vm851_vm2, %v2637_v15 }
 0xb41   :  { %v4906_v26 = vpop.f32.mrb[48].mxu1 }
 0xb42   :  { %v2738_v63 = vadd.f32 %v4906_v26, %v4305_v43  ;;  %v2732_v44 = vpop.f32.mrb[49].mxu1 }
 0xb43   :  { %v2733_v46 = vadd.f32 %v4305_v43, %v2732_v44 }
 0xb44   :  { %v2762_v54 = vmax.f32 %v2738_v63, 0.0 }
 0xb45   :  { %v2761_v58 = vmax.f32 %v2733_v46, 0.0  ;;  %v4909_v48 = vpop.f32.mrb[50].mxu1 }
 0xb46   :  { %v2748_v56 = vadd.f32 %v4909_v48, %v4305_v43  ;;  %v2742_v9 = vpop.f32.mrb[51].mxu1 }
 0xb47   :  { %v2743_v49 = vadd.f32 %v4305_v43, %v2742_v9  ;;  %4917 = vmatprep.mubr.msk.f32.mxu1 %vm851_vm2, %v2761_v58 }
 0xb48   :  { %4918 = vmatmul.mubr.msk.f32.vlgmr.msra.gmra.mrb[54].mxu1 %vm851_vm2, %v2762_v54  ;;  %v2764_v59 = vmax.f32 %v2748_v56, 0.0 }
 0xb49   :  { %v2763_v18 = vmax.f32 %v2743_v49, 0.0  ;;  %v4912_v50 = vpop.f32.mrb[52].mxu1 }
 0xb4a   :  { %v2758_v62 = vadd.f32 %v4912_v50, %v4305_v43  ;;  %v2752_v0 = vpop.f32.mrb[53].mxu1 }
 0xb4b   :  { %v2753_v51 = vadd.f32 %v4305_v43, %v2752_v0  ;;  %4920 = vmatprep.mubr.msk.f32.mxu1 %vm851_vm2, %v2763_v18 }
 0xb4c   :  { %4921 = vmatmul.mubr.msk.f32.gmra.mrb[56].mxu1 %vm851_vm2, %v2764_v59  ;;  %v2766_v5 = vmax.f32 %v2758_v62, 0.0 }
 0xb4d   :  { %v2765_v3 = vmax.f32 %v2753_v51, 0.0 }
 0xb4f   :  { %4923 = vmatprep.mubr.msk.f32.mxu1 %vm851_vm2, %v2765_v3 }
 0xb50   :  { %4924 = vmatmul.mubr.msk.f32.gmra.mrb[58].mxu1 %vm851_vm2, %v2766_v5  ;;  %v4321_v5 = vld [vmem:[%s6562_s17 + $0x8] sm:$0xf] }
 0xb51   :  { %4938 = vmatprep.mubr.msk.f32.mxu1 %vm924_vm3, %v5459_v25  ;;  %4952 = vmatprep.subr.msk.mxu0 %vm2301_vm9, %v4321_v5 }
 0xc1b   :  { %v4919_v19 = vpop.f32.mrb[54].mxu1 }
 0xc1c   :  { %v2866_v34 = vadd.f32 %v4919_v19, %v4312_v53  ;;  %v2860_v55 = vpop.f32.mrb[55].mxu1 }
 0xc1d   :  { %v2861_v23 = vadd.f32 %v4312_v53, %v2860_v55  ;;  %v4340_v55 = vld [vmem:[%s6566_s19 + $0x18] sm:$0xff] }
 0xc1e   :  { %v2890_v24 = vsub.f32 0.0, %v2866_v34  ;;  %v4339_v34 = vld [vmem:[%s6566_s19 + $0x10] sm:$0xff] }
 0xc1f   :  { %v2889_v37 = vsub.f32 0.0, %v2861_v23  ;;  %v4922_v39 = vpop.f32.mrb[56].mxu1  ;;  %v5244_v23 = vpack.c.bf16 %v4340_v55, %v4339_v34 }
 0xc20   :  { %v2897_v45 = vmul.f32 1.442695, %v2890_v24  ;;  %v2876_v52 = vadd.f32 %v4922_v39, %v4312_v53  ;;  %v2870_v57 = vpop.f32.mrb[57].mxu1  ;;  %v4336_v24 = vld [vmem:[%s6565_s20 + $0x3] ss:$0 sm:$0xff] }
 0xc21   :  { %v2895_v60 = vmul.f32 1.442695, %v2889_v37  ;;  %v2871_v29 = vadd.f32 %v4312_v53, %v2870_v57 }
 0xc22   :  { %5399 = vpow2.f32 %v2897_v45  ;;  %v2892_v2 = vsub.f32 0.0, %v2876_v52 }
 0xc23   :  { %5401 = vpow2.f32 %v2895_v60  ;;  %v2891_v21 = vsub.f32 0.0, %v2871_v29  ;;  %v4925_v32 = vpop.f32.mrb[58].mxu1  ;;  %v4342_v29 = vld [vmem:[%s6567_s21 + $0x1] ss:$0 sm:$0xff] }
 0xc24   :  { %v2901_v1 = vmul.f32 1.442695, %v2892_v2  ;;  %v2886_v33 = vadd.f32 %v4925_v32, %v4312_v53  ;;  %v2880_v4 = vpop.f32.mrb[59].mxu1 }
 0xc25   :  { %v2899_v47 = vmul.f32 1.442695, %v2891_v21  ;;  %v2881_v28 = vadd.f32 %v4312_v53, %v2880_v4 }
 0xc26   :  { %5403 = vpow2.f32 %v2901_v1  ;;  %v2894_v27 = vsub.f32 0.0, %v2886_v33 }
 0xc27   :  { %5405 = vpow2.f32 %v2899_v47  ;;  %v2893_v20 = vsub.f32 0.0, %v2881_v28 }
 0xc28   :  { %v2905_v12 = vmul.f32 1.442695, %v2894_v27 }
 0xc29   :  { %v2903_v15 = vmul.f32 1.442695, %v2893_v20 }
 0xc2a   :  { %5407 = vpow2.f32 %v2905_v12 }
 0xc2b   :  { %5409 = vpow2.f32 %v2903_v15 }
 0xc2c   :  { %v5400_v38 = vpop.eup %5399 }
 0xc2d   :  { %v5402_v11 = vpop.eup %5401  ;;  %v2908_v22 = vadd.f32 1.0, %v5400_v38  ;;  %v4351_v38 = vld [vmem:[%s6568_s22 + $0x20] sm:$0xff] }
 0xc2e   :  { %v2907_v43 = vadd.f32 1.0, %v5402_v11  ;;  %v4352_v11 = vld [vmem:[%s6568_s22 + $0x28] sm:$0xff] }
 0xc2f   :  { %5411 = vrcp.f32 %v2908_v22 }
 0xc30   :  { %v5404_v26 = vpop.eup %5403  ;;  %5413 = vrcp.f32 %v2907_v43 }
 0xc31   :  { %v5406_v63 = vpop.eup %5405  ;;  %v2910_v44 = vadd.f32 1.0, %v5404_v26  ;;  %v5248_v26 = vpack.c.bf16 %v4352_v11, %v4351_v38 }
 0xc32   :  { %v2909_v46 = vadd.f32 1.0, %v5406_v63 }
 0xc33   :  { %5415 = vrcp.f32 %v2910_v44  ;;  %v3876_v44 = vld [vmem:[%s6569_s24 + $0x8] sm:$0xff] }
 0xc34   :  { %v5408_v58 = vpop.eup %5407  ;;  %5417 = vrcp.f32 %v2909_v46 }
 0xc35   :  { %v5410_v48 = vpop.eup %5409  ;;  %v2912_v54 = vadd.f32 1.0, %v5408_v58  ;;  %v3499_v58 = vld [vmem:[%s6568_s22 + $0x10] sm:$0xff] }
 0xc36   :  { %v2911_v56 = vadd.f32 1.0, %v5410_v48  ;;  %v3500_v48 = vld [vmem:[%s6568_s22 + $0x18] sm:$0xff] }
 0xc37   :  { %5419 = vrcp.f32 %v2912_v54 }
 0xc38   :  { %5421 = vrcp.f32 %v2911_v56 }
 0xc39   :  { %v6353_v9 = vpop.eup %5411 }
 0xc3a   :  { %v6355_v49 = vpop.eup %5413 }
 0xc3b   :  { %v5220_v18 = vpack.c.bf16 %v6353_v9, %v6355_v49 }
 0xc3d   :  { %v6359_v50 = vpop.eup %5415  ;;  %5221 = vmatprep.subr.bf16.mxu1 %v5220_v18 }
 0xc3e   :  { %v6361_v59 = vpop.eup %5417  ;;  %5223 = vmatpush3.bf16.msra.mxu1 %v5220_v18 }
 0xc3f   :  { %v5224_v62 = vpack.c.bf16 %v6359_v50, %v6361_v59 }
 0xc41   :  { %v6365_v0 = vpop.eup %5419  ;;  %5225 = vmatprep.subr.bf16.mxu1 %v5224_v62 }
 0xc42   :  { %v6367_v51 = vpop.eup %5421  ;;  %5227 = vmatpush3.bf16.msra.mxu1 %v5224_v62  ;;  %v5260_v62 = vpack.c.bf16 %v3500_v48, %v3499_v58 }
 0xc43   :  { %v5228_v3 = vpack.c.bf16 %v6365_v0, %v6367_v51 }
 0xc45   :  { %5229 = vmatprep.subr.bf16.mxu1 %v5228_v3 }
 0xc46   :  { %5231 = vmatpush3.bf16.msra.mxu1 %v5228_v3 }
 0xc47   :  { %5245 = vmatprep.subr.bf16.mxu1 %v5244_v23 }
 0xc49   :  { %4939 = vmatmul.mubr.msk.f32.vlgmr.msra.gmra.mrb[60].mxu1 %vm924_vm3, %v6193_v61  ;;  %v4333_v61 = vld [vmem:[%s6564_s18 + $0x10] sm:$0xff] }
 0xc4a   :  { %v5240_v8 = vpack.c.bf16 %v4334_v30, %v4333_v61  ;;  %5247 = vmatpush3.bf16.msra.mxu1 %v5244_v23 }
 0xc4b   :  { %4971 = vmatprep.subr.bf16.mxu1 %v5460_v13 }
 0xd1c   :  { %v4940_v25 = vpop.f32.mrb[60].mxu1 }
 0xd1d   :  { %v2991_v7 = vpop.f32.mrb[61].mxu1 }
 0xd1e   :  { %4949 = vmatprep.mubr.msk.f32.mxu0 %vm117_vm0, %v2991_v7  ;;  %v4368_v7 = vld [vmem:[%s6568_s22 + $0x48] sm:$0xff] }
 0xd1f   :  { %4950 = vmatmul.mubr.msk.f32.vlgmr.msra.gmra.mrb[60].mxu0 %vm117_vm0, %v4940_v25  ;;  %v4367_v25 = vld [vmem:[%s6568_s22 + $0x40] sm:$0xff] }
 0xd20   :  { %4954 = vmatprep.mubr.msk.f32.mxu0 %vm2282_vm10, %v6204_v42  ;;  %4953 = vmatpush3.msk.msra.mxu0 %vm2301_vm9, %v4321_v5  ;;  %v4332_v42 = vld [vmem:[%s6565_s20 + $0x2] ss:$0 sm:$0xff] }
 0xd21   :  { %5241 = vmatprep.subr.bf16.mxu0 %v5240_v8 }
 0xd27   :  { %4955 = vmatmul.mubr.msk.f32.vlgmr.msra.gmra.mrb[60].mxu0 %vm2282_vm10, %v6202_v14 }
 0xd28   :  { %5243 = vmatpush3.bf16.msra.mxu0 %v5240_v8 }
 0xd29   :  { %4985 = vmatprep.subr.bf16.mxu0 %v5460_v13 }
 0xdfa   :  { %v4956_v10 = vpop.f32.mrb[60].mxu0 }
 0xdfb   :  { %v3181_v16 = vadd.f32 %v4956_v10, %v4332_v42  ;;  %v3163_v14 = vpop.f32.mrb[61].mxu0 }
 0xdfc   :  { %v3180_v17 = vadd.f32 %v4332_v42, %v3163_v14  ;;  %v5264_v42 = vpack.c.bf16 %v4368_v7, %v4367_v25 }
 0xdfd   :  { %v3183_v19 = vmax.f32 %v3181_v16, 0.0 }
 0xdfe   :  { %v3182_v53 = vmax.f32 %v3180_v17, 0.0 }
 0xe00   :  { %4961 = vmatprep.mubr.msk.f32.mxu0 %vm851_vm2, %v3182_v53 }
 0xe01   :  { %4962 = vmatmul.mubr.msk.f32.vlgmr.msra.gmra.mrb[62].mxu0 %vm851_vm2, %v3183_v19 }
 0xe02   :  { %4987 = vmatprep.mubr.msk.bf16.mxu0 %vm5461_vm1, %v5460_v13 }
 0xed4   :  { %v4963_v37 = vpop.f32.mrb[62].mxu0 }
 0xed5   :  { %v3273_v39 = vadd.f32 %v4963_v37, %v4336_v24  ;;  %v3267_v45 = vpop.f32.mrb[63].mxu0 }
 0xed6   :  { %v3268_v52 = vadd.f32 %v4336_v24, %v3267_v45 }
 0xed7   :  { %v3277_v60 = vmax.f32 %v3273_v39, 0.0 }
 0xed8   :  { %v3276_v57 = vmax.f32 %v3268_v52, 0.0  ;;  %v4369_v52 = vld [vmem:[%s6568_s22 + $0x50] sm:$0xff] }
 0xeda   :  { %4968 = vmatprep.mubr.msk.f32.mxu1 %vm851_vm2, %v3276_v57  ;;  %v4370_v57 = vld [vmem:[%s6568_s22 + $0x58] sm:$0xff] }
 0xedb   :  { %4969 = vmatmul.mubr.msk.f32.vlgmr.msra.gmra.mrb[62].mxu1 %vm851_vm2, %v3277_v60 }
 0xedc   :  { %4973 = vmatprep.mubr.msk.bf16.mxu1 %vm5461_vm1, %v5460_v13 }
 0xfae   :  { %v4970_v2 = vpop.f32.mrb[62].mxu1 }
 0xfaf   :  { %v3367_v21 = vadd.f32 %v4970_v2, %v4342_v29  ;;  %v3361_v32 = vpop.f32.mrb[63].mxu1 }
 0xfb0   :  { %v3362_v1 = vadd.f32 %v4342_v29, %v3361_v32 }
 0xfb1   :  { %v3371_v33 = vsub.f32 0.0, %v3367_v21  ;;  %v5268_v21 = vpack.c.bf16 %v4370_v57, %v4369_v52 }
 0xfb2   :  { %v3370_v4 = vsub.f32 0.0, %v3362_v1 }
 0xfb3   :  { %v3374_v47 = vmul.f32 1.442695, %v3371_v33 }
 0xfb4   :  { %v3372_v28 = vmul.f32 1.442695, %v3370_v4 }
 0xfb5   :  { %5423 = vpow2.f32 %v3374_v47 }
 0xfb6   :  { %5425 = vpow2.f32 %v3372_v28 }
 0xfbf   :  { %v5424_v27 = vpop.eup %5423 }
 0xfc0   :  { %v5426_v20 = vpop.eup %5425  ;;  %v3377_v12 = vadd.f32 1.0, %v5424_v27 }
 0xfc1   :  { %v3376_v15 = vadd.f32 1.0, %v5426_v20 }
 0xfc2   :  { %5427 = vrcp.f32 %v3377_v12 }
 0xfc3   :  { %5429 = vrcp.f32 %v3376_v15 }
 0xfcc   :  { %v5428_v22 = vpop.eup %5427 }
 0xfcd   :  { %v5430_v43 = vpop.eup %5429 }
 0xfce   :  { %v3382_v63 = vpack.c.bf16 %v5428_v22, %v5430_v43  ;;  %v4003_v43 = vld [vmem:[%s6571_s26] sm:$0xff] }
 0xfd0   :  { %4972 = vmatpush3.bf16.msra.mxu1 %v3382_v63  ;;  %4986 = vmatpush3.bf16.msra.mxu0 %v3382_v63 }
 0xfd1   :  { %5249 = vmatprep.subr.bf16.mxu1 %v5248_v26 }
 0xfd3   :  { %4974 = vmatmul.mubr.msk.bf16.vlgmr.msra.gmra.mrb[64].mxu1 %vm851_vm2, %v6220_v36  ;;  %4988 = vmatmul.mubr.msk.bf16.vlgmr.msra.gmra.mrb[64].mxu0 %vm851_vm2, %v6214_v35  ;;  %v4353_v35 = vld [vmem:[%s6568_s22 + $0x30] sm:$0xff]  ;;  %v4354_v36 = vld [vmem:[%s6568_s22 + $0x38] sm:$0xff] }
 0xfd4   :  { %4977 = vmatprep.mubr.msk.bf16.mxu1 %vm5461_vm1, %v5460_v13  ;;  %4991 = vmatprep.mubr.msk.bf16.mxu0 %vm5461_vm1, %v5460_v13 }
 0xfd5   :  { %5251 = vmatpush3.bf16.msra.mxu1 %v5248_v26  ;;  %v4004_v26 = vld [vmem:[%s6571_s26 + $0x8] sm:$0xff] }
 0xfd6   :  { %v5276_v63 = vpack.c.bf16 %v4004_v26, %v4003_v43 }
 0xfdb   :  { %4978 = vmatmul.mubr.msk.bf16.gmra.mrb[68].mxu1 %vm851_vm2, %v6239_v6  ;;  %4992 = vmatmul.mubr.msk.bf16.gmra.mrb[68].mxu0 %vm851_vm2, %v6234_v40  ;;  %v5252_v40 = vpack.c.bf16 %v4354_v36, %v4353_v35  ;;  %v3498_v6 = vld [vmem:[%s6568_s22 + $0x8] sm:$0xff]  ;;  %v4378_v35 = vld [vmem:[%s6572_s25] ss:$0 sm:$0xff] }
 0xfdc   :  { %4981 = vmatprep.mubr.msk.bf16.mxu1 %vm5461_vm1, %v5460_v13  ;;  %4995 = vmatprep.mubr.msk.bf16.mxu0 %vm5461_vm1, %v5460_v13  ;;  %v3497_v13 = vld [vmem:[%s6568_s22] sm:$0xff] }
 0xfdd   :  { %5253 = vmatprep.subr.bf16.mxu1 %v5252_v40 }
 0xfde   :  { %5255 = vmatpush3.bf16.msra.mxu1 %v5252_v40 }
 0xfe3   :  { %4982 = vmatmul.mubr.msk.bf16.gmra.mrb[72].mxu1 %vm851_vm2, %v6257_v41  ;;  %4996 = vmatmul.mubr.msk.bf16.gmra.mrb[72].mxu0 %vm851_vm2, %v6252_v31  ;;  %v5256_v31 = vpack.c.bf16 %v3498_v6, %v3497_v13  ;;  %v3875_v41 = vld [vmem:[%s6569_s24] sm:$0xff] }
 0xfe4   :  { %v5272_v46 = vpack.c.bf16 %v3876_v44, %v3875_v41 }
 0xfe5   :  { %5257 = vmatprep.subr.bf16.mxu1 %v5256_v31 }
 0xfe6   :  { %5273 = vmatprep.subr.bf16.mxu0 %v5272_v46 }
 0xfe7   :  { %5275 = vmatpush3.bf16.msra.mxu0 %v5272_v46 }
 0xfe8   :  { %5277 = vmatprep.subr.bf16.mxu0 %v5276_v63 }
0x10a6   :  { %v3417_v54 = vpop.f32.mrb[64].mxu1  ;;  %v3474_v56 = vpop.f32.mrb[64].mxu0 }
0x10a7   :  { %v4975_v18 = vpop.f32.mrb[65].mxu1  ;;  %5007 = vmatprep.mubr.msk.f32.mxu1 %vm117_vm0, %v3417_v54  ;;  %v4989_v3 = vpop.f32.mrb[65].mxu0 }
0x10a8   :  { %v3420_v5 = vpop.f32.mrb[66].mxu1  ;;  %v3477_v61 = vpop.f32.mrb[66].mxu0 }
0x10a9   :  { %v4976_v30 = vpop.f32.mrb[67].mxu1  ;;  %5008 = vmatmul.mubr.msk.f32.vlgmr.msra.gmra.mrb[76].mxu1 %vm117_vm0, %v3420_v5  ;;  %v4990_v8 = vpop.f32.mrb[67].mxu0 }
0x10aa   :  { %5259 = vmatpush3.bf16.msra.mxu1 %v5256_v31 }
0x10ab   :  { %5261 = vmatprep.subr.bf16.mxu1 %v5260_v62 }
0x10ae   :  { %v3425_v10 = vpop.f32.mrb[68].mxu1  ;;  %5263 = vmatpush3.bf16.msra.mxu1 %v5260_v62  ;;  %v3482_v16 = vpop.f32.mrb[68].mxu0 }
0x10af   :  { %v4979_v14 = vpop.f32.mrb[69].mxu1  ;;  %5010 = vmatprep.mubr.msk.f32.mxu1 %vm117_vm0, %v3425_v10  ;;  %5265 = vmatprep.subr.bf16.mxu1 %v5264_v42  ;;  %v4993_v17 = vpop.f32.mrb[69].mxu0 }
0x10b0   :  { %v3428_v53 = vpop.f32.mrb[70].mxu1  ;;  %v3485_v19 = vpop.f32.mrb[70].mxu0 }
0x10b1   :  { %v4980_v34 = vpop.f32.mrb[71].mxu1  ;;  %5011 = vmatmul.mubr.msk.f32.gmra.mrb[78].mxu1 %vm117_vm0, %v3428_v53  ;;  %v4994_v55 = vpop.f32.mrb[71].mxu0 }
0x10b6   :  { %v3433_v23 = vpop.f32.mrb[72].mxu1  ;;  %v3490_v24 = vpop.f32.mrb[72].mxu0 }
0x10b7   :  { %v4983_v37 = vpop.f32.mrb[73].mxu1  ;;  %5013 = vmatprep.mubr.msk.f32.mxu1 %vm117_vm0, %v3433_v23  ;;  %v4997_v39 = vpop.f32.mrb[73].mxu0 }
0x10b8   :  { %v3436_v45 = vpop.f32.mrb[74].mxu1  ;;  %v3493_v60 = vpop.f32.mrb[74].mxu0 }
0x10b9   :  { %5014 = vmatmul.mubr.msk.f32.gmra.mrb[80].mxu1 %vm117_vm0, %v3436_v45  ;;  %v4984_v29 = vpop.f32.mrb[75].mxu1  ;;  %v4998_v2 = vpop.f32.mrb[75].mxu0 }
0x10ba   :  { %5024 = vmatprep.mubr.msk.f32.mxu1 %vm117_vm0, %v6355_v49 }
0x10bd   :  { %5025 = vmatmul.mubr.msk.f32.vlgmr.msra.gmra.mrb[76].mxu1 %vm117_vm0, %v6353_v9  ;;  %v4377_v9 = vld [vmem:[%s6570_s23] ss:$0 sm:$0xff] }
0x10be   :  { %5027 = vmatprep.mubr.msk.f32.mxu1 %vm117_vm0, %v6361_v59  ;;  %5267 = vmatpush3.bf16.msra.mxu1 %v5264_v42 }
0x10bf   :  { %5269 = vmatprep.subr.bf16.mxu1 %v5268_v21 }
0x10c1   :  { %5028 = vmatmul.mubr.msk.f32.gmra.mrb[78].mxu1 %vm117_vm0, %v6359_v50 }
0x10c2   :  { %5030 = vmatprep.mubr.msk.f32.mxu1 %vm117_vm0, %v6367_v51  ;;  %5271 = vmatpush3.bf16.msra.mxu1 %v5268_v21 }
0x10c5   :  { %5031 = vmatmul.mubr.msk.f32.gmra.mrb[80].mxu1 %vm117_vm0, %v6365_v0 }
0x10c6   :  { %5041 = vmatprep.mubr.msk.f32.mxu1 %vm117_vm0, %v3474_v56 }
0x10c9   :  { %5042 = vmatmul.mubr.msk.f32.vlgmr.msra.gmra.mrb[76].mxu1 %vm117_vm0, %v3477_v61  ;;  %v4385_v61 = vld [vmem:[%s6573_s27] ss:$0 sm:$0xff] }
0x10ca   :  { %5044 = vmatprep.mubr.msk.f32.mxu1 %vm117_vm0, %v3482_v16 }
0x10cd   :  { %5045 = vmatmul.mubr.msk.f32.gmra.mrb[78].mxu1 %vm117_vm0, %v3485_v19 }
0x10ce   :  { %5047 = vmatprep.mubr.msk.f32.mxu1 %vm117_vm0, %v3490_v24 }
0x10d1   :  { %5048 = vmatmul.mubr.msk.f32.gmra.mrb[80].mxu1 %vm117_vm0, %v3493_v60 }
0x119c   :  { %v5043_v49 = vpop.f32.mrb[76].mxu1 }
0x119d   :  { %v3864_v50 = vadd.f32 %v5043_v49, %v4377_v9  ;;  %v3821_v59 = vpop.f32.mrb[77].mxu1 }
0x119e   :  { %v3863_v0 = vadd.f32 %v4377_v9, %v3821_v59 }
0x119f   :  { %v3870_v1 = vmax.f32 %v3864_v50, 0.0 }
0x11a0   :  { %v3869_v51 = vmax.f32 %v3863_v0, 0.0  ;;  %v5046_v32 = vpop.f32.mrb[78].mxu1 }
0x11a1   :  { %v3866_v33 = vadd.f32 %v5046_v32, %v4377_v9  ;;  %v3831_v4 = vpop.f32.mrb[79].mxu1 }
0x11a2   :  { %v3865_v47 = vadd.f32 %v4377_v9, %v3831_v4  ;;  %5054 = vmatprep.mubr.msk.f32.mxu0 %vm851_vm2, %v3869_v51 }
0x11a3   :  { %5055 = vmatmul.mubr.msk.f32.vlgmr.msra.gmra.mrb[76].mxu0 %vm851_vm2, %v3870_v1  ;;  %v3872_v20 = vmax.f32 %v3866_v33, 0.0 }
0x11a4   :  { %v3871_v28 = vmax.f32 %v3865_v47, 0.0  ;;  %v5049_v27 = vpop.f32.mrb[80].mxu1  ;;  %5279 = vmatpush3.bf16.msra.mxu0 %v5276_v63 }
0x11a5   :  { %v3868_v12 = vadd.f32 %v5049_v27, %v4377_v9  ;;  %v3841_v15 = vpop.f32.mrb[81].mxu1 }
0x11a6   :  { %v3867_v38 = vadd.f32 %v4377_v9, %v3841_v15  ;;  %5057 = vmatprep.mubr.msk.f32.mxu0 %vm851_vm2, %v3871_v28 }
0x11a7   :  { %5058 = vmatmul.mubr.msk.f32.gmra.mrb[78].mxu0 %vm851_vm2, %v3872_v20  ;;  %v3874_v22 = vmax.f32 %v3868_v12, 0.0 }
0x11a8   :  { %v3873_v11 = vmax.f32 %v3867_v38, 0.0 }
0x11aa   :  { %5060 = vmatprep.mubr.msk.f32.mxu0 %vm851_vm2, %v3873_v11 }
0x11ab   :  { %5061 = vmatmul.mubr.msk.f32.gmra.mrb[80].mxu0 %vm851_vm2, %v3874_v22 }
0x1276   :  { %v5056_v36 = vpop.f32.mrb[76].mxu0 }
0x1277   :  { %v3974_v40 = vadd.f32 %v5056_v36, %v4378_v35  ;;  %v3968_v13 = vpop.f32.mrb[77].mxu0 }
0x1278   :  { %v3969_v6 = vadd.f32 %v4378_v35, %v3968_v13 }
0x1279   :  { %v3998_v44 = vmax.f32 %v3974_v40, 0.0 }
0x127a   :  { %v3997_v31 = vmax.f32 %v3969_v6, 0.0  ;;  %v5059_v41 = vpop.f32.mrb[78].mxu0 }
0x127b   :  { %v3984_v46 = vadd.f32 %v5059_v41, %v4378_v35  ;;  %v3978_v58 = vpop.f32.mrb[79].mxu0 }
0x127c   :  { %v3979_v48 = vadd.f32 %v4378_v35, %v3978_v58  ;;  %5067 = vmatprep.mubr.msk.f32.mxu0 %vm851_vm2, %v3997_v31 }
0x127d   :  { %5068 = vmatmul.mubr.msk.f32.vlgmr.msra.gmra.mrb[82].mxu0 %vm851_vm2, %v3998_v44  ;;  %v4000_v18 = vmax.f32 %v3984_v46, 0.0 }
0x127e   :  { %v3999_v54 = vmax.f32 %v3979_v48, 0.0  ;;  %v5062_v56 = vpop.f32.mrb[80].mxu0 }
0x127f   :  { %v3994_v62 = vadd.f32 %v5062_v56, %v4378_v35  ;;  %v3988_v3 = vpop.f32.mrb[81].mxu0 }
0x1280   :  { %v3989_v5 = vadd.f32 %v4378_v35, %v3988_v3  ;;  %5070 = vmatprep.mubr.msk.f32.mxu0 %vm851_vm2, %v3999_v54 }
0x1281   :  { %5071 = vmatmul.mubr.msk.f32.gmra.mrb[84].mxu0 %vm851_vm2, %v4000_v18  ;;  %v4002_v7 = vmax.f32 %v3994_v62, 0.0 }
0x1282   :  { %v4001_v25 = vmax.f32 %v3989_v5, 0.0 }
0x1284   :  { %5073 = vmatprep.mubr.msk.f32.mxu0 %vm851_vm2, %v4001_v25 }
0x1285   :  { %5074 = vmatmul.mubr.msk.f32.gmra.mrb[86].mxu0 %vm851_vm2, %v4002_v7 }
0x1350   :  { %v5069_v30 = vpop.f32.mrb[82].mxu0 }
0x1351   :  { %v4102_v8 = vadd.f32 %v5069_v30, %v4385_v61  ;;  %v4096_v42 = vpop.f32.mrb[83].mxu0 }
0x1352   :  { %v4097_v10 = vadd.f32 %v4385_v61, %v4096_v42 }
0x1353   :  { %v4126_v16 = vsub.f32 0.0, %v4102_v8 }
0x1354   :  { %v4125_v14 = vsub.f32 0.0, %v4097_v10  ;;  %v5072_v17 = vpop.f32.mrb[84].mxu0 }
0x1355   :  { %v4133_v53 = vmul.f32 1.442695, %v4126_v16  ;;  %v4112_v19 = vadd.f32 %v5072_v17, %v4385_v61  ;;  %v4106_v34 = vpop.f32.mrb[85].mxu0 }
0x1356   :  { %v4131_v55 = vmul.f32 1.442695, %v4125_v14  ;;  %v4107_v23 = vadd.f32 %v4385_v61, %v4106_v34 }
0x1357   :  { %5431 = vpow2.f32 %v4133_v53  ;;  %v4128_v24 = vsub.f32 0.0, %v4112_v19 }
0x1358   :  { %5433 = vpow2.f32 %v4131_v55  ;;  %v4127_v37 = vsub.f32 0.0, %v4107_v23  ;;  %v5075_v39 = vpop.f32.mrb[86].mxu0 }
0x1359   :  { %v4137_v45 = vmul.f32 1.442695, %v4128_v24  ;;  %v4122_v52 = vadd.f32 %v5075_v39, %v4385_v61  ;;  %v4116_v57 = vpop.f32.mrb[87].mxu0 }
0x135a   :  { %v4135_v60 = vmul.f32 1.442695, %v4127_v37  ;;  %v4117_v29 = vadd.f32 %v4385_v61, %v4116_v57 }
0x135b   :  { %5435 = vpow2.f32 %v4137_v45  ;;  %v4130_v2 = vsub.f32 0.0, %v4122_v52 }
0x135c   :  { %5437 = vpow2.f32 %v4135_v60  ;;  %v4129_v21 = vsub.f32 0.0, %v4117_v29 }
0x135d   :  { %v4141_v9 = vmul.f32 1.442695, %v4130_v2 }
0x135e   :  { %v4139_v49 = vmul.f32 1.442695, %v4129_v21 }
0x135f   :  { %5439 = vpow2.f32 %v4141_v9 }
0x1360   :  { %5441 = vpow2.f32 %v4139_v49 }
0x1361   :  { %v5432_v50 = vpop.eup %5431 }
0x1362   :  { %v5434_v59 = vpop.eup %5433  ;;  %v4144_v0 = vadd.f32 1.0, %v5432_v50 }
0x1363   :  { %v4143_v51 = vadd.f32 1.0, %v5434_v59 }
0x1364   :  { %5443 = vrcp.f32 %v4144_v0 }
0x1365   :  { %v5436_v32 = vpop.eup %5435  ;;  %5445 = vrcp.f32 %v4143_v51 }
0x1366   :  { %v5438_v1 = vpop.eup %5437  ;;  %v4146_v33 = vadd.f32 1.0, %v5436_v32 }
0x1367   :  { %v4145_v4 = vadd.f32 1.0, %v5438_v1 }
0x1368   :  { %5447 = vrcp.f32 %v4146_v33 }
0x1369   :  { %v5440_v47 = vpop.eup %5439  ;;  %5449 = vrcp.f32 %v4145_v4 }
0x136a   :  { %v5442_v28 = vpop.eup %5441  ;;  %v4148_v27 = vadd.f32 1.0, %v5440_v47 }
0x136b   :  { %v4147_v20 = vadd.f32 1.0, %v5442_v28 }
0x136c   :  { %5451 = vrcp.f32 %v4148_v27 }
0x136d   :  { %5453 = vrcp.f32 %v4147_v20 }
0x136e   :  { %v5444_v12 = vpop.eup %5443 }
0x136f   :  { %v5446_v15 = vpop.eup %5445  ;;  %4162 = vst [vmem:[%s6574_s28 + $0x8] sm:$0xff] %v5444_v12 }
0x1370   :  { %4161 = vst [vmem:[%s6574_s28] sm:$0xff] %v5446_v15 }
0x1372   :  { %v5448_v38 = vpop.eup %5447 }
0x1373   :  { %v5450_v11 = vpop.eup %5449  ;;  %4164 = vst [vmem:[%s6574_s28 + $0x18] sm:$0xff] %v5448_v38 }
0x1374   :  { %4163 = vst [vmem:[%s6574_s28 + $0x10] sm:$0xff] %v5450_v11 }
0x1376   :  { %v5452_v22 = vpop.eup %5451 }
0x1377   :  { %v5454_v43 = vpop.eup %5453  ;;  %4166 = vst [vmem:[%s6574_s28 + $0x28] sm:$0xff] %v5452_v22 }
0x1378   :  { %4165 = vst [vmem:[%s6574_s28 + $0x20] sm:$0xff] %v5454_v43 }

</bundles_post_ra>
